<compile_context>
chip_gen: v6e
topology: v6e:2x2x1
jax: 0.10.0
libtpu: 0.0.40
codegen_flags: <defaults>
</compile_context>

<pallas_src>
import jax
import jax.numpy as jnp
from jax.experimental import pallas as pl
from jax.experimental.pallas import tpu as pltpu


def lstm_recurrence_kernel(xg_ref, whh_ref, h_out_ref):
    """Serial LSTM recurrence (the only part that must run step-by-step).

    xg_ref   : (T, 4, B, H) f32 -- per-gate x_t @ W_ih^T + (b_ih + b_hh),
                                   gate order i, f, g, o, each lane-aligned.
    whh_ref  : (4, H, H)    f32 or bf16 -- per-gate W_hh pre-transposed for h @ W.
    h_out_ref: (B, H)       f32 -- final hidden state h_T.
    """
    T = xg_ref.shape[0]
    B = xg_ref.shape[2]
    H = xg_ref.shape[3]
    mxu_dtype = whh_ref.dtype            # bf16 operands -> single-pass MXU push

    # Hoist the four (H, H) recurrent weight tiles out of the loop (fits in
    # vregs at toy H; for production H re-read whh_ref[g] inside the loop).
    w_i = whh_ref[0]
    w_f = whh_ref[1]
    w_g = whh_ref[2]
    w_o = whh_ref[3]

    def step(t, carry):
        h, c = carry
        hm = h.astype(mxu_dtype)         # cast only the MXU operand
        xg_t = xg_ref[t]                 # (4, B, H) f32
        # Per-gate lane-aligned pre-activations: no sub-vreg lane extracts of
        # a (B, 4H) slab on the serial path.  All post-matmul math is f32.
        i_g = jax.nn.sigmoid(
            xg_t[0] + jnp.dot(hm, w_i, preferred_element_type=jnp.float32))
        f_g = jax.nn.sigmoid(
            xg_t[1] + jnp.dot(hm, w_f, preferred_element_type=jnp.float32))
        g_g = jnp.tanh(
            xg_t[2] + jnp.dot(hm, w_g, preferred_element_type=jnp.float32))
        o_g = jax.nn.sigmoid(
            xg_t[3] + jnp.dot(hm, w_o, preferred_element_type=jnp.float32))
        c_new = f_g * c + i_g * g_g
        h_new = o_g * jnp.tanh(c_new)
        return h_new, c_new

    h0 = jnp.zeros((B, H), jnp.float32)
    c0 = jnp.zeros((B, H), jnp.float32)
    # Fully unroll short sequences; for long sequences keep unroll=8 so the
    # scheduler can overlap xg loads / EUP pushes with the previous step's
    # dependent MXU/VPU chain (a plain rolled loop loses ~35%).
    h_T, _ = jax.lax.fori_loop(0, T, step, (h0, c0),
                               unroll=(True if T <= 32 else 8))
    h_out_ref[...] = h_T


def prepare_params(w_ih, w_hh, b_ih, b_hh, w_fc, b_fc, *, mxu_dtype=jnp.float32):
    """One-time (outside jit) weight re-layout: no per-call transposes."""
    H4, I = w_ih.shape
    H = H4 // 4
    return dict(
        w_ih4=w_ih.reshape(4, H, I),                                   # (4,H,I)
        w_hh4=jnp.transpose(w_hh.reshape(4, H, H), (0, 2, 1)).astype(mxu_dtype),
        b4=(b_ih + b_hh).reshape(4, 1, H),                             # (4,1,H)
        w_fc_t=jnp.transpose(w_fc),                                    # (H,O)
        b_fc=b_fc,
    )


@jax.jit
def trading_model_forward(x, params):
    """x: (B, T, I) float32 (PyTorch batch_first layout). Returns (B, O)."""
    B, T, I = x.shape
    w_hh4 = params["w_hh4"]
    H = w_hh4.shape[1]

    # Hoisted input projection for all timesteps: one big MXU matmul, emitted
    # directly in time-major, per-gate (T, 4, B, H) layout with the combined
    # LSTM bias folded in (no per-step bias add, no lane-splitting in-kernel).
    # TODO(synk): store xg in bf16 for production T to halve HBM->VMEM traffic.
    xg = jnp.einsum("bti,ghi->tgbh", x, params["w_ih4"]) + params["b4"]

    h_T = pl.pallas_call(
        lstm_recurrence_kernel,
        out_shape=jax.ShapeDtypeStruct((B, H), jnp.float32),
        # No grid: single invocation, whole operands VMEM-resident (a few KiB
        # at these shapes).  See TODO at top for the T/B-blocked grid version.
        in_specs=[
            pl.BlockSpec(memory_space=pltpu.MemorySpace.VMEM),   # xg
            pl.BlockSpec(memory_space=pltpu.MemorySpace.VMEM),   # W_hh tiles
        ],
        out_specs=pl.BlockSpec(memory_space=pltpu.MemorySpace.VMEM),
    )(xg, w_hh4)

    # Tiny final FC (O=4) outside the kernel: avoids a masked 4-lane-wide
    # store and keeps the kernel as pure recurrence.
    return h_T @ params["w_fc_t"] + params["b_fc"]


def reference_forward(x, w_ih, w_hh, b_ih, b_hh, w_fc, b_fc, hidden_size):
    """Pure-JAX reference matching torch.nn.LSTM + Linear semantics."""
    B, T, I = x.shape
    H = hidden_size

    def step(carry, x_t):
        h, c = carry
        gates = x_t @ w_ih.T + b_ih + h @ w_hh.T + b_hh
        i = jax.nn.sigmoid(gates[:, 0:H])
        f = jax.nn.sigmoid(gates[:, H:2 * H])
        g = jnp.tanh(gates[:, 2 * H:3 * H])
        o = jax.nn.sigmoid(gates[:, 3 * H:4 * H])
        c = f * c + i * g
        h = o * jnp.tanh(c)
        return (h, c), h

    init = (jnp.zeros((B, H), jnp.float32), jnp.zeros((B, H), jnp.float32))
    (h_T, _), _ = jax.lax.scan(step, init, jnp.transpose(x, (1, 0, 2)))
    return h_T @ w_fc.T + b_fc


if __name__ == "__main__":
    # Small shapes consistent with the module's forward:
    # x: (batch=2, seq=8, input_size=16), hidden_size=32, output_size=4.
    B, T, I, H, O = 2, 8, 16, 32, 4

    key = jax.random.PRNGKey(0)
    k_x, k_wih, k_whh, k_bih, k_bhh, k_wfc, k_bfc = jax.random.split(key, 7)

    scale = 1.0 / jnp.sqrt(H)
    x = jax.random.normal(k_x, (B, T, I), dtype=jnp.float32)
    w_ih = jax.random.uniform(k_wih, (4 * H, I), jnp.float32, -scale, scale)
    w_hh = jax.random.uniform(k_whh, (4 * H, H), jnp.float32, -scale, scale)
    b_ih = jax.random.uniform(k_bih, (4 * H,), jnp.float32, -scale, scale)
    b_hh = jax.random.uniform(k_bhh, (4 * H,), jnp.float32, -scale, scale)
    w_fc = jax.random.uniform(k_wfc, (O, H), jnp.float32, -scale, scale)
    b_fc = jax.random.uniform(k_bfc, (O,), jnp.float32, -scale, scale)

    ref = reference_forward(x, w_ih, w_hh, b_ih, b_hh, w_fc, b_fc, H)

    # f32 MXU config: exact-semantics path, tight tolerance vs f32 reference.
    params_f32 = prepare_params(w_ih, w_hh, b_ih, b_hh, w_fc, b_fc,
                                mxu_dtype=jnp.float32)
    out_f32 = jax.block_until_ready(trading_model_forward(x, params_f32))
    assert out_f32.shape == (B, O)
    assert jnp.allclose(out_f32, ref, atol=1e-5, rtol=1e-5), (out_f32, ref)

    # bf16 MXU-operand config (single-pass MXU push on the serial h->h chain);
    # post-matmul gate math stays f32, so only a loose tolerance is needed.
    params_bf16 = prepare_params(w_ih, w_hh, b_ih, b_hh, w_fc, b_fc,
                                 mxu_dtype=jnp.bfloat16)
    out_bf16 = jax.block_until_ready(trading_model_forward(x, params_bf16))
    assert out_bf16.shape == (B, O)
    assert jnp.allclose(out_bf16, ref, atol=5e-2, rtol=5e-2), (out_bf16, ref)

    print("KERNEL_OK")
</pallas_src>

<mosaic_0001>
module attributes {stable_mosaic.version = 11 : i64} {
  func.func @lstm_recurrence_kernel(%arg0: memref<8x4x2x32xf32, #tpu.memory_space<vmem>>, %arg1: memref<4x32x32xf32, #tpu.memory_space<vmem>>, %arg2: memref<2x32xf32, #tpu.memory_space<vmem>>) attributes {dimension_semantics = [], scalar_prefetch = 0 : i64, scratch_operands = 0 : i64, tpu.core_type = #tpu.core_type<tc>} {
    %c0 = arith.constant 0 : index
    %c0_0 = arith.constant 0 : index
    %c0_1 = arith.constant 0 : index
    %0 = vector.load %arg1[%c0, %c0_0, %c0_1] : memref<4x32x32xf32, #tpu.memory_space<vmem>>, vector<1x32x32xf32>
    %1 = vector.shape_cast %0 : vector<1x32x32xf32> to vector<32x32xf32>
    %c1 = arith.constant 1 : index
    %c0_2 = arith.constant 0 : index
    %c0_3 = arith.constant 0 : index
    %2 = vector.load %arg1[%c1, %c0_2, %c0_3] : memref<4x32x32xf32, #tpu.memory_space<vmem>>, vector<1x32x32xf32>
    %3 = vector.shape_cast %2 : vector<1x32x32xf32> to vector<32x32xf32>
    %c2 = arith.constant 2 : index
    %c0_4 = arith.constant 0 : index
    %c0_5 = arith.constant 0 : index
    %4 = vector.load %arg1[%c2, %c0_4, %c0_5] : memref<4x32x32xf32, #tpu.memory_space<vmem>>, vector<1x32x32xf32>
    %5 = vector.shape_cast %4 : vector<1x32x32xf32> to vector<32x32xf32>
    %c3 = arith.constant 3 : index
    %c0_6 = arith.constant 0 : index
    %c0_7 = arith.constant 0 : index
    %6 = vector.load %arg1[%c3, %c0_6, %c0_7] : memref<4x32x32xf32, #tpu.memory_space<vmem>>, vector<1x32x32xf32>
    %7 = vector.shape_cast %6 : vector<1x32x32xf32> to vector<32x32xf32>
    %cst = arith.constant 0.000000e+00 : f32
    %8 = vector.broadcast %cst : f32 to vector<2x32xf32>
    %cst_8 = arith.constant 0.000000e+00 : f32
    %9 = vector.broadcast %cst_8 : f32 to vector<2x32xf32>
    %c0_i32 = arith.constant 0 : i32
    %10 = arith.index_cast %c0_i32 : i32 to index
    %c0_9 = arith.constant 0 : index
    %c0_10 = arith.constant 0 : index
    %c0_11 = arith.constant 0 : index
    %11 = vector.load %arg0[%10, %c0_9, %c0_10, %c0_11] : memref<8x4x2x32xf32, #tpu.memory_space<vmem>>, vector<1x4x2x32xf32>
    %12 = vector.shape_cast %11 : vector<1x4x2x32xf32> to vector<4x2x32xf32>
    %13 = vector.extract_strided_slice %12 {offsets = [0, 0, 0], sizes = [1, 2, 32], strides = [1, 1, 1]} : vector<4x2x32xf32> to vector<1x2x32xf32>
    %14 = vector.shape_cast %13 : vector<1x2x32xf32> to vector<2x32xf32>
    %cst_12 = arith.constant dense<0.000000e+00> : vector<2x32xf32>
    %15 = tpu.matmul %8, %1, %cst_12 {dimension_numbers = #tpu.dot_dimension_numbers<[1], [0], [0], [1], [0, 0, 1, 1], [], []>} : vector<2x32xf32>, vector<32x32xf32>, vector<2x32xf32> -> vector<2x32xf32>
    %16 = arith.addf %14, %15 : vector<2x32xf32>
    %17 = arith.negf %16 : vector<2x32xf32>
    %18 = math.exp %17 : vector<2x32xf32>
    %cst_13 = arith.constant 1.000000e+00 : f32
    %19 = vector.broadcast %cst_13 : f32 to vector<2x32xf32>
    %20 = arith.addf %19, %18 : vector<2x32xf32>
    %21 = arith.divf %19, %20 : vector<2x32xf32>
    %22 = vector.extract_strided_slice %12 {offsets = [1, 0, 0], sizes = [1, 2, 32], strides = [1, 1, 1]} : vector<4x2x32xf32> to vector<1x2x32xf32>
    %23 = vector.shape_cast %22 : vector<1x2x32xf32> to vector<2x32xf32>
    %cst_14 = arith.constant dense<0.000000e+00> : vector<2x32xf32>
    %24 = tpu.matmul %8, %3, %cst_14 {dimension_numbers = #tpu.dot_dimension_numbers<[1], [0], [0], [1], [0, 0, 1, 1], [], []>} : vector<2x32xf32>, vector<32x32xf32>, vector<2x32xf32> -> vector<2x32xf32>
    %25 = arith.addf %23, %24 : vector<2x32xf32>
    %26 = arith.negf %25 : vector<2x32xf32>
    %27 = math.exp %26 : vector<2x32xf32>
    %cst_15 = arith.constant 1.000000e+00 : f32
    %28 = vector.broadcast %cst_15 : f32 to vector<2x32xf32>
    %29 = arith.addf %28, %27 : vector<2x32xf32>
    %30 = arith.divf %28, %29 : vector<2x32xf32>
    %31 = vector.extract_strided_slice %12 {offsets = [2, 0, 0], sizes = [1, 2, 32], strides = [1, 1, 1]} : vector<4x2x32xf32> to vector<1x2x32xf32>
    %32 = vector.shape_cast %31 : vector<1x2x32xf32> to vector<2x32xf32>
    %cst_16 = arith.constant dense<0.000000e+00> : vector<2x32xf32>
    %33 = tpu.matmul %8, %5, %cst_16 {dimension_numbers = #tpu.dot_dimension_numbers<[1], [0], [0], [1], [0, 0, 1, 1], [], []>} : vector<2x32xf32>, vector<32x32xf32>, vector<2x32xf32> -> vector<2x32xf32>
    %34 = arith.addf %32, %33 : vector<2x32xf32>
    %35 = math.tanh %34 : vector<2x32xf32>
    %36 = vector.extract_strided_slice %12 {offsets = [3, 0, 0], sizes = [1, 2, 32], strides = [1, 1, 1]} : vector<4x2x32xf32> to vector<1x2x32xf32>
    %37 = vector.shape_cast %36 : vector<1x2x32xf32> to vector<2x32xf32>
    %cst_17 = arith.constant dense<0.000000e+00> : vector<2x32xf32>
    %38 = tpu.matmul %8, %7, %cst_17 {dimension_numbers = #tpu.dot_dimension_numbers<[1], [0], [0], [1], [0, 0, 1, 1], [], []>} : vector<2x32xf32>, vector<32x32xf32>, vector<2x32xf32> -> vector<2x32xf32>
    %39 = arith.addf %37, %38 : vector<2x32xf32>
    %40 = arith.negf %39 : vector<2x32xf32>
    %41 = math.exp %40 : vector<2x32xf32>
    %cst_18 = arith.constant 1.000000e+00 : f32
    %42 = vector.broadcast %cst_18 : f32 to vector<2x32xf32>
    %43 = arith.addf %42, %41 : vector<2x32xf32>
    %44 = arith.divf %42, %43 : vector<2x32xf32>
    %45 = arith.mulf %30, %9 : vector<2x32xf32>
    %46 = arith.mulf %21, %35 : vector<2x32xf32>
    %47 = arith.addf %45, %46 : vector<2x32xf32>
    %48 = math.tanh %47 : vector<2x32xf32>
    %49 = arith.mulf %44, %48 : vector<2x32xf32>
    %c1_i32 = arith.constant 1 : i32
    %50 = arith.index_cast %c1_i32 : i32 to index
    %c0_19 = arith.constant 0 : index
    %c0_20 = arith.constant 0 : index
    %c0_21 = arith.constant 0 : index
    %51 = vector.load %arg0[%50, %c0_19, %c0_20, %c0_21] : memref<8x4x2x32xf32, #tpu.memory_space<vmem>>, vector<1x4x2x32xf32>
    %52 = vector.shape_cast %51 : vector<1x4x2x32xf32> to vector<4x2x32xf32>
    %53 = vector.extract_strided_slice %52 {offsets = [0, 0, 0], sizes = [1, 2, 32], strides = [1, 1, 1]} : vector<4x2x32xf32> to vector<1x2x32xf32>
    %54 = vector.shape_cast %53 : vector<1x2x32xf32> to vector<2x32xf32>
    %cst_22 = arith.constant dense<0.000000e+00> : vector<2x32xf32>
    %55 = tpu.matmul %49, %1, %cst_22 {dimension_numbers = #tpu.dot_dimension_numbers<[1], [0], [0], [1], [0, 0, 1, 1], [], []>} : vector<2x32xf32>, vector<32x32xf32>, vector<2x32xf32> -> vector<2x32xf32>
    %56 = arith.addf %54, %55 : vector<2x32xf32>
    %57 = arith.negf %56 : vector<2x32xf32>
    %58 = math.exp %57 : vector<2x32xf32>
    %cst_23 = arith.constant 1.000000e+00 : f32
    %59 = vector.broadcast %cst_23 : f32 to vector<2x32xf32>
    %60 = arith.addf %59, %58 : vector<2x32xf32>
    %61 = arith.divf %59, %60 : vector<2x32xf32>
    %62 = vector.extract_strided_slice %52 {offsets = [1, 0, 0], sizes = [1, 2, 32], strides = [1, 1, 1]} : vector<4x2x32xf32> to vector<1x2x32xf32>
    %63 = vector.shape_cast %62 : vector<1x2x32xf32> to vector<2x32xf32>
    %cst_24 = arith.constant dense<0.000000e+00> : vector<2x32xf32>
    %64 = tpu.matmul %49, %3, %cst_24 {dimension_numbers = #tpu.dot_dimension_numbers<[1], [0], [0], [1], [0, 0, 1, 1], [], []>} : vector<2x32xf32>, vector<32x32xf32>, vector<2x32xf32> -> vector<2x32xf32>
    %65 = arith.addf %63, %64 : vector<2x32xf32>
    %66 = arith.negf %65 : vector<2x32xf32>
    %67 = math.exp %66 : vector<2x32xf32>
    %cst_25 = arith.constant 1.000000e+00 : f32
    %68 = vector.broadcast %cst_25 : f32 to vector<2x32xf32>
    %69 = arith.addf %68, %67 : vector<2x32xf32>
    %70 = arith.divf %68, %69 : vector<2x32xf32>
    %71 = vector.extract_strided_slice %52 {offsets = [2, 0, 0], sizes = [1, 2, 32], strides = [1, 1, 1]} : vector<4x2x32xf32> to vector<1x2x32xf32>
    %72 = vector.shape_cast %71 : vector<1x2x32xf32> to vector<2x32xf32>
    %cst_26 = arith.constant dense<0.000000e+00> : vector<2x32xf32>
    %73 = tpu.matmul %49, %5, %cst_26 {dimension_numbers = #tpu.dot_dimension_numbers<[1], [0], [0], [1], [0, 0, 1, 1], [], []>} : vector<2x32xf32>, vector<32x32xf32>, vector<2x32xf32> -> vector<2x32xf32>
    %74 = arith.addf %72, %73 : vector<2x32xf32>
    %75 = math.tanh %74 : vector<2x32xf32>
    %76 = vector.extract_strided_slice %52 {offsets = [3, 0, 0], sizes = [1, 2, 32], strides = [1, 1, 1]} : vector<4x2x32xf32> to vector<1x2x32xf32>
    %77 = vector.shape_cast %76 : vector<1x2x32xf32> to vector<2x32xf32>
    %cst_27 = arith.constant dense<0.000000e+00> : vector<2x32xf32>
    %78 = tpu.matmul %49, %7, %cst_27 {dimension_numbers = #tpu.dot_dimension_numbers<[1], [0], [0], [1], [0, 0, 1, 1], [], []>} : vector<2x32xf32>, vector<32x32xf32>, vector<2x32xf32> -> vector<2x32xf32>
    %79 = arith.addf %77, %78 : vector<2x32xf32>
    %80 = arith.negf %79 : vector<2x32xf32>
    %81 = math.exp %80 : vector<2x32xf32>
    %cst_28 = arith.constant 1.000000e+00 : f32
    %82 = vector.broadcast %cst_28 : f32 to vector<2x32xf32>
    %83 = arith.addf %82, %81 : vector<2x32xf32>
    %84 = arith.divf %82, %83 : vector<2x32xf32>
    %85 = arith.mulf %70, %47 : vector<2x32xf32>
    %86 = arith.mulf %61, %75 : vector<2x32xf32>
    %87 = arith.addf %85, %86 : vector<2x32xf32>
    %88 = math.tanh %87 : vector<2x32xf32>
    %89 = arith.mulf %84, %88 : vector<2x32xf32>
    %c2_i32 = arith.constant 2 : i32
    %90 = arith.index_cast %c2_i32 : i32 to index
    %c0_29 = arith.constant 0 : index
    %c0_30 = arith.constant 0 : index
    %c0_31 = arith.constant 0 : index
    %91 = vector.load %arg0[%90, %c0_29, %c0_30, %c0_31] : memref<8x4x2x32xf32, #tpu.memory_space<vmem>>, vector<1x4x2x32xf32>
    %92 = vector.shape_cast %91 : vector<1x4x2x32xf32> to vector<4x2x32xf32>
    %93 = vector.extract_strided_slice %92 {offsets = [0, 0, 0], sizes = [1, 2, 32], strides = [1, 1, 1]} : vector<4x2x32xf32> to vector<1x2x32xf32>
    %94 = vector.shape_cast %93 : vector<1x2x32xf32> to vector<2x32xf32>
    %cst_32 = arith.constant dense<0.000000e+00> : vector<2x32xf32>
    %95 = tpu.matmul %89, %1, %cst_32 {dimension_numbers = #tpu.dot_dimension_numbers<[1], [0], [0], [1], [0, 0, 1, 1], [], []>} : vector<2x32xf32>, vector<32x32xf32>, vector<2x32xf32> -> vector<2x32xf32>
    %96 = arith.addf %94, %95 : vector<2x32xf32>
    %97 = arith.negf %96 : vector<2x32xf32>
    %98 = math.exp %97 : vector<2x32xf32>
    %cst_33 = arith.constant 1.000000e+00 : f32
    %99 = vector.broadcast %cst_33 : f32 to vector<2x32xf32>
    %100 = arith.addf %99, %98 : vector<2x32xf32>
    %101 = arith.divf %99, %100 : vector<2x32xf32>
    %102 = vector.extract_strided_slice %92 {offsets = [1, 0, 0], sizes = [1, 2, 32], strides = [1, 1, 1]} : vector<4x2x32xf32> to vector<1x2x32xf32>
    %103 = vector.shape_cast %102 : vector<1x2x32xf32> to vector<2x32xf32>
    %cst_34 = arith.constant dense<0.000000e+00> : vector<2x32xf32>
    %104 = tpu.matmul %89, %3, %cst_34 {dimension_numbers = #tpu.dot_dimension_numbers<[1], [0], [0], [1], [0, 0, 1, 1], [], []>} : vector<2x32xf32>, vector<32x32xf32>, vector<2x32xf32> -> vector<2x32xf32>
    %105 = arith.addf %103, %104 : vector<2x32xf32>
    %106 = arith.negf %105 : vector<2x32xf32>
    %107 = math.exp %106 : vector<2x32xf32>
    %cst_35 = arith.constant 1.000000e+00 : f32
    %108 = vector.broadcast %cst_35 : f32 to vector<2x32xf32>
    %109 = arith.addf %108, %107 : vector<2x32xf32>
    %110 = arith.divf %108, %109 : vector<2x32xf32>
    %111 = vector.extract_strided_slice %92 {offsets = [2, 0, 0], sizes = [1, 2, 32], strides = [1, 1, 1]} : vector<4x2x32xf32> to vector<1x2x32xf32>
    %112 = vector.shape_cast %111 : vector<1x2x32xf32> to vector<2x32xf32>
    %cst_36 = arith.constant dense<0.000000e+00> : vector<2x32xf32>
    %113 = tpu.matmul %89, %5, %cst_36 {dimension_numbers = #tpu.dot_dimension_numbers<[1], [0], [0], [1], [0, 0, 1, 1], [], []>} : vector<2x32xf32>, vector<32x32xf32>, vector<2x32xf32> -> vector<2x32xf32>
    %114 = arith.addf %112, %113 : vector<2x32xf32>
    %115 = math.tanh %114 : vector<2x32xf32>
    %116 = vector.extract_strided_slice %92 {offsets = [3, 0, 0], sizes = [1, 2, 32], strides = [1, 1, 1]} : vector<4x2x32xf32> to vector<1x2x32xf32>
    %117 = vector.shape_cast %116 : vector<1x2x32xf32> to vector<2x32xf32>
    %cst_37 = arith.constant dense<0.000000e+00> : vector<2x32xf32>
    %118 = tpu.matmul %89, %7, %cst_37 {dimension_numbers = #tpu.dot_dimension_numbers<[1], [0], [0], [1], [0, 0, 1, 1], [], []>} : vector<2x32xf32>, vector<32x32xf32>, vector<2x32xf32> -> vector<2x32xf32>
    %119 = arith.addf %117, %118 : vector<2x32xf32>
    %120 = arith.negf %119 : vector<2x32xf32>
    %121 = math.exp %120 : vector<2x32xf32>
    %cst_38 = arith.constant 1.000000e+00 : f32
    %122 = vector.broadcast %cst_38 : f32 to vector<2x32xf32>
    %123 = arith.addf %122, %121 : vector<2x32xf32>
    %124 = arith.divf %122, %123 : vector<2x32xf32>
    %125 = arith.mulf %110, %87 : vector<2x32xf32>
    %126 = arith.mulf %101, %115 : vector<2x32xf32>
    %127 = arith.addf %125, %126 : vector<2x32xf32>
    %128 = math.tanh %127 : vector<2x32xf32>
    %129 = arith.mulf %124, %128 : vector<2x32xf32>
    %c3_i32 = arith.constant 3 : i32
    %130 = arith.index_cast %c3_i32 : i32 to index
    %c0_39 = arith.constant 0 : index
    %c0_40 = arith.constant 0 : index
    %c0_41 = arith.constant 0 : index
    %131 = vector.load %arg0[%130, %c0_39, %c0_40, %c0_41] : memref<8x4x2x32xf32, #tpu.memory_space<vmem>>, vector<1x4x2x32xf32>
    %132 = vector.shape_cast %131 : vector<1x4x2x32xf32> to vector<4x2x32xf32>
    %133 = vector.extract_strided_slice %132 {offsets = [0, 0, 0], sizes = [1, 2, 32], strides = [1, 1, 1]} : vector<4x2x32xf32> to vector<1x2x32xf32>
    %134 = vector.shape_cast %133 : vector<1x2x32xf32> to vector<2x32xf32>
    %cst_42 = arith.constant dense<0.000000e+00> : vector<2x32xf32>
    %135 = tpu.matmul %129, %1, %cst_42 {dimension_numbers = #tpu.dot_dimension_numbers<[1], [0], [0], [1], [0, 0, 1, 1], [], []>} : vector<2x32xf32>, vector<32x32xf32>, vector<2x32xf32> -> vector<2x32xf32>
    %136 = arith.addf %134, %135 : vector<2x32xf32>
    %137 = arith.negf %136 : vector<2x32xf32>
    %138 = math.exp %137 : vector<2x32xf32>
    %cst_43 = arith.constant 1.000000e+00 : f32
    %139 = vector.broadcast %cst_43 : f32 to vector<2x32xf32>
    %140 = arith.addf %139, %138 : vector<2x32xf32>
    %141 = arith.divf %139, %140 : vector<2x32xf32>
    %142 = vector.extract_strided_slice %132 {offsets = [1, 0, 0], sizes = [1, 2, 32], strides = [1, 1, 1]} : vector<4x2x32xf32> to vector<1x2x32xf32>
    %143 = vector.shape_cast %142 : vector<1x2x32xf32> to vector<2x32xf32>
    %cst_44 = arith.constant dense<0.000000e+00> : vector<2x32xf32>
    %144 = tpu.matmul %129, %3, %cst_44 {dimension_numbers = #tpu.dot_dimension_numbers<[1], [0], [0], [1], [0, 0, 1, 1], [], []>} : vector<2x32xf32>, vector<32x32xf32>, vector<2x32xf32> -> vector<2x32xf32>
    %145 = arith.addf %143, %144 : vector<2x32xf32>
    %146 = arith.negf %145 : vector<2x32xf32>
    %147 = math.exp %146 : vector<2x32xf32>
    %cst_45 = arith.constant 1.000000e+00 : f32
    %148 = vector.broadcast %cst_45 : f32 to vector<2x32xf32>
    %149 = arith.addf %148, %147 : vector<2x32xf32>
    %150 = arith.divf %148, %149 : vector<2x32xf32>
    %151 = vector.extract_strided_slice %132 {offsets = [2, 0, 0], sizes = [1, 2, 32], strides = [1, 1, 1]} : vector<4x2x32xf32> to vector<1x2x32xf32>
    %152 = vector.shape_cast %151 : vector<1x2x32xf32> to vector<2x32xf32>
    %cst_46 = arith.constant dense<0.000000e+00> : vector<2x32xf32>
    %153 = tpu.matmul %129, %5, %cst_46 {dimension_numbers = #tpu.dot_dimension_numbers<[1], [0], [0], [1], [0, 0, 1, 1], [], []>} : vector<2x32xf32>, vector<32x32xf32>, vector<2x32xf32> -> vector<2x32xf32>
    %154 = arith.addf %152, %153 : vector<2x32xf32>
    %155 = math.tanh %154 : vector<2x32xf32>
    %156 = vector.extract_strided_slice %132 {offsets = [3, 0, 0], sizes = [1, 2, 32], strides = [1, 1, 1]} : vector<4x2x32xf32> to vector<1x2x32xf32>
    %157 = vector.shape_cast %156 : vector<1x2x32xf32> to vector<2x32xf32>
    %cst_47 = arith.constant dense<0.000000e+00> : vector<2x32xf32>
    %158 = tpu.matmul %129, %7, %cst_47 {dimension_numbers = #tpu.dot_dimension_numbers<[1], [0], [0], [1], [0, 0, 1, 1], [], []>} : vector<2x32xf32>, vector<32x32xf32>, vector<2x32xf32> -> vector<2x32xf32>
    %159 = arith.addf %157, %158 : vector<2x32xf32>
    %160 = arith.negf %159 : vector<2x32xf32>
    %161 = math.exp %160 : vector<2x32xf32>
    %cst_48 = arith.constant 1.000000e+00 : f32
    %162 = vector.broadcast %cst_48 : f32 to vector<2x32xf32>
    %163 = arith.addf %162, %161 : vector<2x32xf32>
    %164 = arith.divf %162, %163 : vector<2x32xf32>
    %165 = arith.mulf %150, %127 : vector<2x32xf32>
    %166 = arith.mulf %141, %155 : vector<2x32xf32>
    %167 = arith.addf %165, %166 : vector<2x32xf32>
    %168 = math.tanh %167 : vector<2x32xf32>
    %169 = arith.mulf %164, %168 : vector<2x32xf32>
    %c4_i32 = arith.constant 4 : i32
    %170 = arith.index_cast %c4_i32 : i32 to index
    %c0_49 = arith.constant 0 : index
    %c0_50 = arith.constant 0 : index
    %c0_51 = arith.constant 0 : index
    %171 = vector.load %arg0[%170, %c0_49, %c0_50, %c0_51] : memref<8x4x2x32xf32, #tpu.memory_space<vmem>>, vector<1x4x2x32xf32>
    %172 = vector.shape_cast %171 : vector<1x4x2x32xf32> to vector<4x2x32xf32>
    %173 = vector.extract_strided_slice %172 {offsets = [0, 0, 0], sizes = [1, 2, 32], strides = [1, 1, 1]} : vector<4x2x32xf32> to vector<1x2x32xf32>
    %174 = vector.shape_cast %173 : vector<1x2x32xf32> to vector<2x32xf32>
    %cst_52 = arith.constant dense<0.000000e+00> : vector<2x32xf32>
    %175 = tpu.matmul %169, %1, %cst_52 {dimension_numbers = #tpu.dot_dimension_numbers<[1], [0], [0], [1], [0, 0, 1, 1], [], []>} : vector<2x32xf32>, vector<32x32xf32>, vector<2x32xf32> -> vector<2x32xf32>
    %176 = arith.addf %174, %175 : vector<2x32xf32>
    %177 = arith.negf %176 : vector<2x32xf32>
    %178 = math.exp %177 : vector<2x32xf32>
    %cst_53 = arith.constant 1.000000e+00 : f32
    %179 = vector.broadcast %cst_53 : f32 to vector<2x32xf32>
    %180 = arith.addf %179, %178 : vector<2x32xf32>
    %181 = arith.divf %179, %180 : vector<2x32xf32>
    %182 = vector.extract_strided_slice %172 {offsets = [1, 0, 0], sizes = [1, 2, 32], strides = [1, 1, 1]} : vector<4x2x32xf32> to vector<1x2x32xf32>
    %183 = vector.shape_cast %182 : vector<1x2x32xf32> to vector<2x32xf32>
    %cst_54 = arith.constant dense<0.000000e+00> : vector<2x32xf32>
    %184 = tpu.matmul %169, %3, %cst_54 {dimension_numbers = #tpu.dot_dimension_numbers<[1], [0], [0], [1], [0, 0, 1, 1], [], []>} : vector<2x32xf32>, vector<32x32xf32>, vector<2x32xf32> -> vector<2x32xf32>
    %185 = arith.addf %183, %184 : vector<2x32xf32>
    %186 = arith.negf %185 : vector<2x32xf32>
    %187 = math.exp %186 : vector<2x32xf32>
    %cst_55 = arith.constant 1.000000e+00 : f32
    %188 = vector.broadcast %cst_55 : f32 to vector<2x32xf32>
    %189 = arith.addf %188, %187 : vector<2x32xf32>
    %190 = arith.divf %188, %189 : vector<2x32xf32>
    %191 = vector.extract_strided_slice %172 {offsets = [2, 0, 0], sizes = [1, 2, 32], strides = [1, 1, 1]} : vector<4x2x32xf32> to vector<1x2x32xf32>
    %192 = vector.shape_cast %191 : vector<1x2x32xf32> to vector<2x32xf32>
    %cst_56 = arith.constant dense<0.000000e+00> : vector<2x32xf32>
    %193 = tpu.matmul %169, %5, %cst_56 {dimension_numbers = #tpu.dot_dimension_numbers<[1], [0], [0], [1], [0, 0, 1, 1], [], []>} : vector<2x32xf32>, vector<32x32xf32>, vector<2x32xf32> -> vector<2x32xf32>
    %194 = arith.addf %192, %193 : vector<2x32xf32>
    %195 = math.tanh %194 : vector<2x32xf32>
    %196 = vector.extract_strided_slice %172 {offsets = [3, 0, 0], sizes = [1, 2, 32], strides = [1, 1, 1]} : vector<4x2x32xf32> to vector<1x2x32xf32>
    %197 = vector.shape_cast %196 : vector<1x2x32xf32> to vector<2x32xf32>
    %cst_57 = arith.constant dense<0.000000e+00> : vector<2x32xf32>
    %198 = tpu.matmul %169, %7, %cst_57 {dimension_numbers = #tpu.dot_dimension_numbers<[1], [0], [0], [1], [0, 0, 1, 1], [], []>} : vector<2x32xf32>, vector<32x32xf32>, vector<2x32xf32> -> vector<2x32xf32>
    %199 = arith.addf %197, %198 : vector<2x32xf32>
    %200 = arith.negf %199 : vector<2x32xf32>
    %201 = math.exp %200 : vector<2x32xf32>
    %cst_58 = arith.constant 1.000000e+00 : f32
    %202 = vector.broadcast %cst_58 : f32 to vector<2x32xf32>
    %203 = arith.addf %202, %201 : vector<2x32xf32>
    %204 = arith.divf %202, %203 : vector<2x32xf32>
    %205 = arith.mulf %190, %167 : vector<2x32xf32>
    %206 = arith.mulf %181, %195 : vector<2x32xf32>
    %207 = arith.addf %205, %206 : vector<2x32xf32>
    %208 = math.tanh %207 : vector<2x32xf32>
    %209 = arith.mulf %204, %208 : vector<2x32xf32>
    %c5_i32 = arith.constant 5 : i32
    %210 = arith.index_cast %c5_i32 : i32 to index
    %c0_59 = arith.constant 0 : index
    %c0_60 = arith.constant 0 : index
    %c0_61 = arith.constant 0 : index
    %211 = vector.load %arg0[%210, %c0_59, %c0_60, %c0_61] : memref<8x4x2x32xf32, #tpu.memory_space<vmem>>, vector<1x4x2x32xf32>
    %212 = vector.shape_cast %211 : vector<1x4x2x32xf32> to vector<4x2x32xf32>
    %213 = vector.extract_strided_slice %212 {offsets = [0, 0, 0], sizes = [1, 2, 32], strides = [1, 1, 1]} : vector<4x2x32xf32> to vector<1x2x32xf32>
    %214 = vector.shape_cast %213 : vector<1x2x32xf32> to vector<2x32xf32>
    %cst_62 = arith.constant dense<0.000000e+00> : vector<2x32xf32>
    %215 = tpu.matmul %209, %1, %cst_62 {dimension_numbers = #tpu.dot_dimension_numbers<[1], [0], [0], [1], [0, 0, 1, 1], [], []>} : vector<2x32xf32>, vector<32x32xf32>, vector<2x32xf32> -> vector<2x32xf32>
    %216 = arith.addf %214, %215 : vector<2x32xf32>
    %217 = arith.negf %216 : vector<2x32xf32>
    %218 = math.exp %217 : vector<2x32xf32>
    %cst_63 = arith.constant 1.000000e+00 : f32
    %219 = vector.broadcast %cst_63 : f32 to vector<2x32xf32>
    %220 = arith.addf %219, %218 : vector<2x32xf32>
    %221 = arith.divf %219, %220 : vector<2x32xf32>
    %222 = vector.extract_strided_slice %212 {offsets = [1, 0, 0], sizes = [1, 2, 32], strides = [1, 1, 1]} : vector<4x2x32xf32> to vector<1x2x32xf32>
    %223 = vector.shape_cast %222 : vector<1x2x32xf32> to vector<2x32xf32>
    %cst_64 = arith.constant dense<0.000000e+00> : vector<2x32xf32>
    %224 = tpu.matmul %209, %3, %cst_64 {dimension_numbers = #tpu.dot_dimension_numbers<[1], [0], [0], [1], [0, 0, 1, 1], [], []>} : vector<2x32xf32>, vector<32x32xf32>, vector<2x32xf32> -> vector<2x32xf32>
    %225 = arith.addf %223, %224 : vector<2x32xf32>
    %226 = arith.negf %225 : vector<2x32xf32>
    %227 = math.exp %226 : vector<2x32xf32>
    %cst_65 = arith.constant 1.000000e+00 : f32
    %228 = vector.broadcast %cst_65 : f32 to vector<2x32xf32>
    %229 = arith.addf %228, %227 : vector<2x32xf32>
    %230 = arith.divf %228, %229 : vector<2x32xf32>
    %231 = vector.extract_strided_slice %212 {offsets = [2, 0, 0], sizes = [1, 2, 32], strides = [1, 1, 1]} : vector<4x2x32xf32> to vector<1x2x32xf32>
    %232 = vector.shape_cast %231 : vector<1x2x32xf32> to vector<2x32xf32>
    %cst_66 = arith.constant dense<0.000000e+00> : vector<2x32xf32>
    %233 = tpu.matmul %209, %5, %cst_66 {dimension_numbers = #tpu.dot_dimension_numbers<[1], [0], [0], [1], [0, 0, 1, 1], [], []>} : vector<2x32xf32>, vector<32x32xf32>, vector<2x32xf32> -> vector<2x32xf32>
    %234 = arith.addf %232, %233 : vector<2x32xf32>
    %235 = math.tanh %234 : vector<2x32xf32>
    %236 = vector.extract_strided_slice %212 {offsets = [3, 0, 0], sizes = [1, 2, 32], strides = [1, 1, 1]} : vector<4x2x32xf32> to vector<1x2x32xf32>
    %237 = vector.shape_cast %236 : vector<1x2x32xf32> to vector<2x32xf32>
    %cst_67 = arith.constant dense<0.000000e+00> : vector<2x32xf32>
    %238 = tpu.matmul %209, %7, %cst_67 {dimension_numbers = #tpu.dot_dimension_numbers<[1], [0], [0], [1], [0, 0, 1, 1], [], []>} : vector<2x32xf32>, vector<32x32xf32>, vector<2x32xf32> -> vector<2x32xf32>
    %239 = arith.addf %237, %238 : vector<2x32xf32>
    %240 = arith.negf %239 : vector<2x32xf32>
    %241 = math.exp %240 : vector<2x32xf32>
    %cst_68 = arith.constant 1.000000e+00 : f32
    %242 = vector.broadcast %cst_68 : f32 to vector<2x32xf32>
    %243 = arith.addf %242, %241 : vector<2x32xf32>
    %244 = arith.divf %242, %243 : vector<2x32xf32>
    %245 = arith.mulf %230, %207 : vector<2x32xf32>
    %246 = arith.mulf %221, %235 : vector<2x32xf32>
    %247 = arith.addf %245, %246 : vector<2x32xf32>
    %248 = math.tanh %247 : vector<2x32xf32>
    %249 = arith.mulf %244, %248 : vector<2x32xf32>
    %c6_i32 = arith.constant 6 : i32
    %250 = arith.index_cast %c6_i32 : i32 to index
    %c0_69 = arith.constant 0 : index
    %c0_70 = arith.constant 0 : index
    %c0_71 = arith.constant 0 : index
    %251 = vector.load %arg0[%250, %c0_69, %c0_70, %c0_71] : memref<8x4x2x32xf32, #tpu.memory_space<vmem>>, vector<1x4x2x32xf32>
    %252 = vector.shape_cast %251 : vector<1x4x2x32xf32> to vector<4x2x32xf32>
    %253 = vector.extract_strided_slice %252 {offsets = [0, 0, 0], sizes = [1, 2, 32], strides = [1, 1, 1]} : vector<4x2x32xf32> to vector<1x2x32xf32>
    %254 = vector.shape_cast %253 : vector<1x2x32xf32> to vector<2x32xf32>
    %cst_72 = arith.constant dense<0.000000e+00> : vector<2x32xf32>
    %255 = tpu.matmul %249, %1, %cst_72 {dimension_numbers = #tpu.dot_dimension_numbers<[1], [0], [0], [1], [0, 0, 1, 1], [], []>} : vector<2x32xf32>, vector<32x32xf32>, vector<2x32xf32> -> vector<2x32xf32>
    %256 = arith.addf %254, %255 : vector<2x32xf32>
    %257 = arith.negf %256 : vector<2x32xf32>
    %258 = math.exp %257 : vector<2x32xf32>
    %cst_73 = arith.constant 1.000000e+00 : f32
    %259 = vector.broadcast %cst_73 : f32 to vector<2x32xf32>
    %260 = arith.addf %259, %258 : vector<2x32xf32>
    %261 = arith.divf %259, %260 : vector<2x32xf32>
    %262 = vector.extract_strided_slice %252 {offsets = [1, 0, 0], sizes = [1, 2, 32], strides = [1, 1, 1]} : vector<4x2x32xf32> to vector<1x2x32xf32>
    %263 = vector.shape_cast %262 : vector<1x2x32xf32> to vector<2x32xf32>
    %cst_74 = arith.constant dense<0.000000e+00> : vector<2x32xf32>
    %264 = tpu.matmul %249, %3, %cst_74 {dimension_numbers = #tpu.dot_dimension_numbers<[1], [0], [0], [1], [0, 0, 1, 1], [], []>} : vector<2x32xf32>, vector<32x32xf32>, vector<2x32xf32> -> vector<2x32xf32>
    %265 = arith.addf %263, %264 : vector<2x32xf32>
    %266 = arith.negf %265 : vector<2x32xf32>
    %267 = math.exp %266 : vector<2x32xf32>
    %cst_75 = arith.constant 1.000000e+00 : f32
    %268 = vector.broadcast %cst_75 : f32 to vector<2x32xf32>
    %269 = arith.addf %268, %267 : vector<2x32xf32>
    %270 = arith.divf %268, %269 : vector<2x32xf32>
    %271 = vector.extract_strided_slice %252 {offsets = [2, 0, 0], sizes = [1, 2, 32], strides = [1, 1, 1]} : vector<4x2x32xf32> to vector<1x2x32xf32>
    %272 = vector.shape_cast %271 : vector<1x2x32xf32> to vector<2x32xf32>
    %cst_76 = arith.constant dense<0.000000e+00> : vector<2x32xf32>
    %273 = tpu.matmul %249, %5, %cst_76 {dimension_numbers = #tpu.dot_dimension_numbers<[1], [0], [0], [1], [0, 0, 1, 1], [], []>} : vector<2x32xf32>, vector<32x32xf32>, vector<2x32xf32> -> vector<2x32xf32>
    %274 = arith.addf %272, %273 : vector<2x32xf32>
    %275 = math.tanh %274 : vector<2x32xf32>
    %276 = vector.extract_strided_slice %252 {offsets = [3, 0, 0], sizes = [1, 2, 32], strides = [1, 1, 1]} : vector<4x2x32xf32> to vector<1x2x32xf32>
    %277 = vector.shape_cast %276 : vector<1x2x32xf32> to vector<2x32xf32>
    %cst_77 = arith.constant dense<0.000000e+00> : vector<2x32xf32>
    %278 = tpu.matmul %249, %7, %cst_77 {dimension_numbers = #tpu.dot_dimension_numbers<[1], [0], [0], [1], [0, 0, 1, 1], [], []>} : vector<2x32xf32>, vector<32x32xf32>, vector<2x32xf32> -> vector<2x32xf32>
    %279 = arith.addf %277, %278 : vector<2x32xf32>
    %280 = arith.negf %279 : vector<2x32xf32>
    %281 = math.exp %280 : vector<2x32xf32>
    %cst_78 = arith.constant 1.000000e+00 : f32
    %282 = vector.broadcast %cst_78 : f32 to vector<2x32xf32>
    %283 = arith.addf %282, %281 : vector<2x32xf32>
    %284 = arith.divf %282, %283 : vector<2x32xf32>
    %285 = arith.mulf %270, %247 : vector<2x32xf32>
    %286 = arith.mulf %261, %275 : vector<2x32xf32>
    %287 = arith.addf %285, %286 : vector<2x32xf32>
    %288 = math.tanh %287 : vector<2x32xf32>
    %289 = arith.mulf %284, %288 : vector<2x32xf32>
    %c7_i32 = arith.constant 7 : i32
    %290 = arith.index_cast %c7_i32 : i32 to index
    %c0_79 = arith.constant 0 : index
    %c0_80 = arith.constant 0 : index
    %c0_81 = arith.constant 0 : index
    %291 = vector.load %arg0[%290, %c0_79, %c0_80, %c0_81] : memref<8x4x2x32xf32, #tpu.memory_space<vmem>>, vector<1x4x2x32xf32>
    %292 = vector.shape_cast %291 : vector<1x4x2x32xf32> to vector<4x2x32xf32>
    %293 = vector.extract_strided_slice %292 {offsets = [0, 0, 0], sizes = [1, 2, 32], strides = [1, 1, 1]} : vector<4x2x32xf32> to vector<1x2x32xf32>
    %294 = vector.shape_cast %293 : vector<1x2x32xf32> to vector<2x32xf32>
    %cst_82 = arith.constant dense<0.000000e+00> : vector<2x32xf32>
    %295 = tpu.matmul %289, %1, %cst_82 {dimension_numbers = #tpu.dot_dimension_numbers<[1], [0], [0], [1], [0, 0, 1, 1], [], []>} : vector<2x32xf32>, vector<32x32xf32>, vector<2x32xf32> -> vector<2x32xf32>
    %296 = arith.addf %294, %295 : vector<2x32xf32>
    %297 = arith.negf %296 : vector<2x32xf32>
    %298 = math.exp %297 : vector<2x32xf32>
    %cst_83 = arith.constant 1.000000e+00 : f32
    %299 = vector.broadcast %cst_83 : f32 to vector<2x32xf32>
    %300 = arith.addf %299, %298 : vector<2x32xf32>
    %301 = arith.divf %299, %300 : vector<2x32xf32>
    %302 = vector.extract_strided_slice %292 {offsets = [1, 0, 0], sizes = [1, 2, 32], strides = [1, 1, 1]} : vector<4x2x32xf32> to vector<1x2x32xf32>
    %303 = vector.shape_cast %302 : vector<1x2x32xf32> to vector<2x32xf32>
    %cst_84 = arith.constant dense<0.000000e+00> : vector<2x32xf32>
    %304 = tpu.matmul %289, %3, %cst_84 {dimension_numbers = #tpu.dot_dimension_numbers<[1], [0], [0], [1], [0, 0, 1, 1], [], []>} : vector<2x32xf32>, vector<32x32xf32>, vector<2x32xf32> -> vector<2x32xf32>
    %305 = arith.addf %303, %304 : vector<2x32xf32>
    %306 = arith.negf %305 : vector<2x32xf32>
    %307 = math.exp %306 : vector<2x32xf32>
    %cst_85 = arith.constant 1.000000e+00 : f32
    %308 = vector.broadcast %cst_85 : f32 to vector<2x32xf32>
    %309 = arith.addf %308, %307 : vector<2x32xf32>
    %310 = arith.divf %308, %309 : vector<2x32xf32>
    %311 = vector.extract_strided_slice %292 {offsets = [2, 0, 0], sizes = [1, 2, 32], strides = [1, 1, 1]} : vector<4x2x32xf32> to vector<1x2x32xf32>
    %312 = vector.shape_cast %311 : vector<1x2x32xf32> to vector<2x32xf32>
    %cst_86 = arith.constant dense<0.000000e+00> : vector<2x32xf32>
    %313 = tpu.matmul %289, %5, %cst_86 {dimension_numbers = #tpu.dot_dimension_numbers<[1], [0], [0], [1], [0, 0, 1, 1], [], []>} : vector<2x32xf32>, vector<32x32xf32>, vector<2x32xf32> -> vector<2x32xf32>
    %314 = arith.addf %312, %313 : vector<2x32xf32>
    %315 = math.tanh %314 : vector<2x32xf32>
    %316 = vector.extract_strided_slice %292 {offsets = [3, 0, 0], sizes = [1, 2, 32], strides = [1, 1, 1]} : vector<4x2x32xf32> to vector<1x2x32xf32>
    %317 = vector.shape_cast %316 : vector<1x2x32xf32> to vector<2x32xf32>
    %cst_87 = arith.constant dense<0.000000e+00> : vector<2x32xf32>
    %318 = tpu.matmul %289, %7, %cst_87 {dimension_numbers = #tpu.dot_dimension_numbers<[1], [0], [0], [1], [0, 0, 1, 1], [], []>} : vector<2x32xf32>, vector<32x32xf32>, vector<2x32xf32> -> vector<2x32xf32>
    %319 = arith.addf %317, %318 : vector<2x32xf32>
    %320 = arith.negf %319 : vector<2x32xf32>
    %321 = math.exp %320 : vector<2x32xf32>
    %cst_88 = arith.constant 1.000000e+00 : f32
    %322 = vector.broadcast %cst_88 : f32 to vector<2x32xf32>
    %323 = arith.addf %322, %321 : vector<2x32xf32>
    %324 = arith.divf %322, %323 : vector<2x32xf32>
    %325 = arith.mulf %310, %287 : vector<2x32xf32>
    %326 = arith.mulf %301, %315 : vector<2x32xf32>
    %327 = arith.addf %325, %326 : vector<2x32xf32>
    %328 = math.tanh %327 : vector<2x32xf32>
    %329 = arith.mulf %324, %328 : vector<2x32xf32>
    %c8_i32 = arith.constant 8 : i32
    %c0_89 = arith.constant 0 : index
    %c0_90 = arith.constant 0 : index
    %330 = vector.load %arg2[%c0_89, %c0_90] : memref<2x32xf32, #tpu.memory_space<vmem>>, vector<2x32xf32>
    tpu.vector_store %arg2[%c0_89, %c0_90], %329 {strides = array<i32>} : memref<2x32xf32, #tpu.memory_space<vmem>>, vector<2x32xf32>,
    return
  }
}

</mosaic_0001>

<bundles_post_ra>
// kernel: trading_model_forward.1
= control target key start
LH: loop header
LB: loop body
LE: loop exit
PB: predicated region body
PF: predicated region fallthrough
CT: control target
= control target key end

     0   :  { %v3314_v0 = vmov 0.0   ;;  %vm3315_vm0 = vmmov 0   ;;  %vm34_vm1 = vcmask 261120   ;;  %vm2558_vm2 = vcmask 254976   ;;  %s3922_s1 = inlined_call_operand.vmem [shape: f32[4,32,32], index: 1, kind: input, shape index: {}]   ;;  %s3923_s0 = inlined_call_operand.vmem [shape: f32[8,4,2,32], index: 0, kind: input, shape index: {}]   ;;  %s3924_s2 = inlined_call_operand.vmem [shape: f32[2,32], index: 2, kind: output, shape index: {}]  }
   0x1   :  { %2816 = vmatprep.subr.mxu0 %v3314_v0  ;;  %2827 = vmatprep.subr.mxu1 %v3314_v0  ;;  %v3336_v1 = vld [vmem:[%s3922_s1 + $0x18] sm:$0xff]  ;;  %v3346_v3 = vld [vmem:[%s3922_s1 + $0x10] sm:$0xff]  ;;  %v3360_v5 = vld [vmem:[%s3922_s1 + $0x8] sm:$0xff] }
   0x2   :  { %v3341_v2 = vld [vmem:[%s3922_s1 + $0x38] sm:$0xff]  ;;  %2817 = vmatpush3.msra.mxu0 %v3336_v1  ;;  %v3353_v4 = vld [vmem:[%s3922_s1 + $0x30] sm:$0xff]  ;;  %v3365_v6 = vld [vmem:[%s3922_s1 + $0x28] sm:$0xff]  ;;  %2824 = vmatprep.mubr.msk.f32.mxu0 %vm3315_vm0, %v3314_v0 }
   0x3   :  { %2828 = vmatpush3.msra.mxu1 %v3341_v2  ;;  %2818 = vmatprep.subr.mxu0 %v3314_v0  ;;  %v3374_v7 = vld [vmem:[%s3922_s1] sm:$0xff]  ;;  %v3394_v9 = vld [vmem:[%s3922_s1 + $0x58] sm:$0xff]  ;;  %v3408_v11 = vld [vmem:[%s3922_s1 + $0x50] sm:$0xff] }
   0x4   :  { %2829 = vmatprep.subr.mxu1 %v3314_v0  ;;  %2819 = vmatpush3.msra.mxu0 %v3346_v3  ;;  %v3381_v8 = vld [vmem:[%s3922_s1 + $0x20] sm:$0xff]  ;;  %v3399_v10 = vld [vmem:[%s3922_s1 + $0x78] sm:$0xff]  ;;  %v3413_v12 = vld [vmem:[%s3922_s1 + $0x70] sm:$0xff] }
   0x5   :  { %2830 = vmatpush3.msra.mxu1 %v3353_v4  ;;  %2820 = vmatprep.subr.mxu0 %v3314_v0  ;;  %v3422_v13 = vld [vmem:[%s3922_s1 + $0x48] sm:$0xff]  ;;  %v3436_v15 = vld [vmem:[%s3922_s1 + $0x40] sm:$0xff] }
   0x6   :  { %2831 = vmatprep.subr.mxu1 %v3314_v0  ;;  %2821 = vmatpush3.msra.mxu0 %v3360_v5  ;;  %v3427_v14 = vld [vmem:[%s3922_s1 + $0x68] sm:$0xff]  ;;  %v3443_v16 = vld [vmem:[%s3922_s1 + $0x60] sm:$0xff] }
   0x7   :  { %2832 = vmatpush3.msra.mxu1 %v3365_v6  ;;  %2822 = vmatprep.subr.mxu0 %v3314_v0  ;;  %v30_v17 = vld [vmem:[%s3923_s0] sm:$0x3]  ;;  %v31_v18 = vld [vmem:[%s3923_s0 + $0x2] sm:$0x3]  ;;  %v33_v27 = vld [vmem:[%s3923_s0 + $0x6] sm:$0x3] }
   0x8   :  { %2833 = vmatprep.subr.mxu1 %v3314_v0  ;;  %2823 = vmatpush3.msra.mxu0 %v3374_v7  ;;  %v32_v31 = vld [vmem:[%s3923_s0 + $0x4] sm:$0x3]  ;;  %v2579_v51 = vld [vmem:[%s3923_s0 + $0x8] sm:$0x3]  ;;  %v2580_v52 = vld [vmem:[%s3923_s0 + $0xa] sm:$0x3] }
   0x9   :  { %2834 = vmatpush3.msra.mxu1 %v3381_v8  ;;  %2835 = vmatprep.mubr.msk.f32.mxu1 %vm3315_vm0, %v3314_v0  ;;  %v2582_v61 = vld [vmem:[%s3923_s0 + $0xe] sm:$0x3] }
   0xa   :  { %2825 = vmatmul.mubr.f32.vlgmr.msra.gmra.mxu0 %v3314_v0  ;;  %2836 = vmatmul.mubr.f32.vlgmr.msra.gmra.mxu1 %v3314_v0 }
   0xb   :  { %2838 = vmatprep.subr.mxu0 %v3314_v0  ;;  %2849 = vmatprep.subr.mxu1 %v3314_v0 }
   0xc   :  { %2839 = vmatpush3.msra.mxu0 %v3394_v9  ;;  %2850 = vmatpush3.msra.mxu1 %v3399_v10 }
   0xd   :  { %2840 = vmatprep.subr.mxu0 %v3314_v0  ;;  %2851 = vmatprep.subr.mxu1 %v3314_v0 }
   0xe   :  { %2841 = vmatpush3.msra.mxu0 %v3408_v11  ;;  %2852 = vmatpush3.msra.mxu1 %v3413_v12 }
   0xf   :  { %2842 = vmatprep.subr.mxu0 %v3314_v0  ;;  %2853 = vmatprep.subr.mxu1 %v3314_v0 }
  0x10   :  { %2843 = vmatpush3.msra.mxu0 %v3422_v13  ;;  %2854 = vmatpush3.msra.mxu1 %v3427_v14 }
  0x11   :  { %2844 = vmatprep.subr.mxu0 %v3314_v0  ;;  %2855 = vmatprep.subr.mxu1 %v3314_v0 }
  0x12   :  { %2845 = vmatpush3.msra.mxu0 %v3436_v15  ;;  %2846 = vmatprep.mubr.msk.f32.mxu0 %vm3315_vm0, %v3314_v0 }
  0x13   :  { %2856 = vmatpush3.msra.mxu1 %v3443_v16  ;;  %2857 = vmatprep.mubr.msk.f32.mxu1 %vm3315_vm0, %v3314_v0 }
  0x14   :  { %2847 = vmatmul.mubr.f32.vlgmr.msra.gmra.mxu0 %v3314_v0  ;;  %2858 = vmatmul.mubr.f32.vlgmr.msra.gmra.mxu1 %v3314_v0 }
  0x15   :  { %2860 = vmatprep.subr.mxu0 %v3314_v0  ;;  %2871 = vmatprep.subr.mxu1 %v3314_v0 }
  0x16   :  { %2861 = vmatpush3.msra.mxu0 %v3336_v1  ;;  %2872 = vmatpush3.msra.mxu1 %v3341_v2 }
  0x17   :  { %2862 = vmatprep.subr.mxu0 %v3314_v0  ;;  %2873 = vmatprep.subr.mxu1 %v3314_v0 }
  0x18   :  { %2863 = vmatpush3.msra.mxu0 %v3346_v3  ;;  %2874 = vmatpush3.msra.mxu1 %v3353_v4 }
  0x19   :  { %2864 = vmatprep.subr.mxu0 %v3314_v0  ;;  %2875 = vmatprep.subr.mxu1 %v3314_v0 }
  0x1a   :  { %2865 = vmatpush3.msra.mxu0 %v3360_v5  ;;  %2876 = vmatpush3.msra.mxu1 %v3365_v6 }
  0x1b   :  { %2866 = vmatprep.subr.mxu0 %v3314_v0  ;;  %2877 = vmatprep.subr.mxu1 %v3314_v0 }
  0x1c   :  { %2867 = vmatpush3.msra.mxu0 %v3374_v7  ;;  %2878 = vmatpush3.msra.mxu1 %v3381_v8 }
  0x1d   :  { %2868 = vmatprep.mubr.msk.f32.mxu0 %vm3315_vm0, %v3314_v0  ;;  %2879 = vmatprep.mubr.msk.f32.mxu1 %vm3315_vm0, %v3314_v0 }
  0x1e   :  { %2882 = vmatprep.subr.mxu0 %v3314_v0  ;;  %2893 = vmatprep.subr.mxu1 %v3314_v0 }
  0xca   :  { %v104_v19 = vpop.f32.mrf.mxu0  ;;  %v181_v20 = vpop.f32.mrf.mxu1 }
  0xcb   :  { %v108_v21 = vadd.f32 %v104_v19, %v30_v17  ;;  %v185_v22 = vadd.f32 %v181_v20, %v31_v18  ;;  %v2581_v20 = vld [vmem:[%s3923_s0 + $0xc] sm:$0x3] }
  0xcc   :  { %v2826_v23 = vpop.f32.mrf.mxu0  ;;  %v2837_v24 = vpop.f32.mrf.mxu1 }
  0xcd   :  { %v2576_v25 = vmul.f32 -1.442695, %v108_v21  ;;  %v2577_v26 = vmul.f32 -1.442695, %v185_v22 }
  0xcf   :  { %3170 = vpow2.f32 %v2576_v25 }
  0xd0   :  { %3172 = vpow2.f32 %v2577_v26 }
  0xd4   :  { %v258_v28 = vpop.f32.mrf.mxu0  ;;  %v330_v29 = vpop.f32.mrf.mxu1 }
  0xd5   :  { %v334_v30 = vadd.f32 %v330_v29, %v33_v27  ;;  %v262_v35 = vadd.f32 %v258_v28, %v32_v31 }
  0xd6   :  { %v2848_v32 = vpop.f32.mrf.mxu0  ;;  %v2859_v33 = vpop.f32.mrf.mxu1 }
  0xd7   :  { %v2578_v34 = vmul.f32 -1.442695, %v334_v30 }
  0xd9   :  { %3174 = vpow2.f32 %v2578_v34 }
  0xda   :  { %3176 = vtanh.f32 %v262_v35 }
  0xdc   :  { %v3171_v36 = vpop.eup %3170 }
  0xdd   :  { %v3173_v37 = vpop.eup %3172  ;;  %v112_v38 = vadd.f32 1.0, %v3171_v36 }
  0xde   :  { %v189_v39 = vadd.f32 1.0, %v3173_v37 }
  0xdf   :  { %3178 = vrcp.f32 %v112_v38  ;;  %v2590_v38 = vld [vmem:[%s3923_s0 + $0x10] sm:$0x3] }
  0xe0   :  { %3180 = vrcp.f32 %v189_v39  ;;  %v2591_v39 = vld [vmem:[%s3923_s0 + $0x12] sm:$0x3] }
  0xe6   :  { %v3175_v40 = vpop.eup %3174 }
  0xe7   :  { %v3177_v41 = vpop.eup %3176  ;;  %v338_v43 = vadd.f32 1.0, %v3175_v40 }
  0xe9   :  { %3182 = vrcp.f32 %v338_v43 }
  0xec   :  { %v3179_v42 = vpop.eup %3178 }
  0xed   :  { %v3181_v44 = vpop.eup %3180  ;;  %v342_v45 = vmul.f32 %v3179_v42, %v3177_v41 }
  0xee   :  { %v341_v46 = vmul.f32 0.0, %v3181_v44 }
  0xf0   :  { %v3489_v47 = vadd.f32 %v342_v45, %v341_v46 }
  0xf2   :  { %3184 = vtanh.f32 %v3489_v47 }
  0xf6   :  { %v3183_v48 = vpop.eup %3182 }
  0xff   :  { %v3185_v49 = vpop.eup %3184 }
 0x100   :  { %v345_v50 = vmul.f32 %v3185_v49, %v3183_v48  ;;  %v2593_v48 = vld [vmem:[%s3923_s0 + $0x16] sm:$0x3] }
 0x102   :  { %2869 = vmatmul.mubr.msk.f32.vlgmr.msra.gmra.mxu0 %vm34_vm1, %v345_v50  ;;  %2880 = vmatmul.mubr.msk.f32.vlgmr.msra.gmra.mxu1 %vm34_vm1, %v345_v50 }
 0x103   :  { %2883 = vmatpush3.msra.mxu0 %v3394_v9  ;;  %2894 = vmatpush3.msra.mxu1 %v3399_v10 }
 0x104   :  { %2884 = vmatprep.subr.mxu0 %v3314_v0  ;;  %2895 = vmatprep.subr.mxu1 %v3314_v0 }
 0x105   :  { %2885 = vmatpush3.msra.mxu0 %v3408_v11  ;;  %2896 = vmatpush3.msra.mxu1 %v3413_v12 }
 0x106   :  { %2886 = vmatprep.subr.mxu0 %v3314_v0  ;;  %2897 = vmatprep.subr.mxu1 %v3314_v0 }
 0x107   :  { %2887 = vmatpush3.msra.mxu0 %v3422_v13  ;;  %2898 = vmatpush3.msra.mxu1 %v3427_v14 }
 0x108   :  { %2888 = vmatprep.subr.mxu0 %v3314_v0  ;;  %2899 = vmatprep.subr.mxu1 %v3314_v0 }
 0x109   :  { %2889 = vmatpush3.msra.mxu0 %v3436_v15  ;;  %2890 = vmatprep.mubr.msk.f32.mxu0 %vm3315_vm0, %v3314_v0 }
 0x10a   :  { %2900 = vmatpush3.msra.mxu1 %v3443_v16  ;;  %2901 = vmatprep.mubr.msk.f32.mxu1 %vm3315_vm0, %v3314_v0 }
 0x10b   :  { %2891 = vmatmul.mubr.msk.f32.vlgmr.msra.gmra.mxu0 %vm34_vm1, %v345_v50  ;;  %2902 = vmatmul.mubr.msk.f32.vlgmr.msra.gmra.mxu1 %vm34_vm1, %v345_v50 }
 0x10c   :  { %2904 = vmatprep.subr.mxu0 %v3314_v0  ;;  %2915 = vmatprep.subr.mxu1 %v3314_v0 }
 0x10d   :  { %2905 = vmatpush3.msra.mxu0 %v3336_v1  ;;  %2916 = vmatpush3.msra.mxu1 %v3341_v2 }
 0x10e   :  { %2906 = vmatprep.subr.mxu0 %v3314_v0  ;;  %2917 = vmatprep.subr.mxu1 %v3314_v0 }
 0x10f   :  { %2907 = vmatpush3.msra.mxu0 %v3346_v3  ;;  %2918 = vmatpush3.msra.mxu1 %v3353_v4 }
 0x110   :  { %2908 = vmatprep.subr.mxu0 %v3314_v0  ;;  %2919 = vmatprep.subr.mxu1 %v3314_v0 }
 0x111   :  { %2909 = vmatpush3.msra.mxu0 %v3360_v5  ;;  %2920 = vmatpush3.msra.mxu1 %v3365_v6 }
 0x112   :  { %2910 = vmatprep.subr.mxu0 %v3314_v0  ;;  %2921 = vmatprep.subr.mxu1 %v3314_v0 }
 0x113   :  { %2911 = vmatpush3.msra.mxu0 %v3374_v7  ;;  %2922 = vmatpush3.msra.mxu1 %v3381_v8 }
 0x114   :  { %2912 = vmatprep.mubr.msk.f32.mxu0 %vm3315_vm0, %v3314_v0  ;;  %2923 = vmatprep.mubr.msk.f32.mxu1 %vm3315_vm0, %v3314_v0 }
 0x115   :  { %2926 = vmatprep.subr.mxu0 %v3314_v0  ;;  %2937 = vmatprep.subr.mxu1 %v3314_v0 }
 0x1c2   :  { %v420_v53 = vpop.f32.mrf.mxu0  ;;  %v497_v54 = vpop.f32.mrf.mxu1 }
 0x1c3   :  { %v424_v55 = vadd.f32 %v2579_v51, %v420_v53  ;;  %v501_v56 = vadd.f32 %v2580_v52, %v497_v54  ;;  %v2592_v54 = vld [vmem:[%s3923_s0 + $0x14] sm:$0x3] }
 0x1c4   :  { %v2870_v57 = vpop.f32.mrf.mxu0  ;;  %v2881_v58 = vpop.f32.mrf.mxu1 }
 0x1c5   :  { %v2584_v59 = vmul.f32 -1.442695, %v424_v55  ;;  %v2586_v60 = vmul.f32 -1.442695, %v501_v56 }
 0x1c7   :  { %3186 = vpow2.f32 %v2584_v59 }
 0x1c8   :  { %3188 = vpow2.f32 %v2586_v60 }
 0x1cb   :  { %v574_v62 = vpop.f32.mrf.mxu0  ;;  %v646_v63 = vpop.f32.mrf.mxu1 }
 0x1cc   :  { %v650_v17 = vadd.f32 %v2582_v61, %v646_v63  ;;  %v578_v22 = vadd.f32 %v2581_v20, %v574_v62 }
 0x1cd   :  { %v2892_v18 = vpop.f32.mrf.mxu0  ;;  %v2903_v19 = vpop.f32.mrf.mxu1 }
 0x1ce   :  { %v2589_v21 = vmul.f32 -1.442695, %v650_v17 }
 0x1d0   :  { %3190 = vpow2.f32 %v2589_v21 }
 0x1d1   :  { %3192 = vtanh.f32 %v578_v22 }
 0x1d4   :  { %v3187_v23 = vpop.eup %3186 }
 0x1d5   :  { %v3189_v24 = vpop.eup %3188  ;;  %v428_v25 = vadd.f32 1.0, %v3187_v23 }
 0x1d6   :  { %v505_v26 = vadd.f32 1.0, %v3189_v24 }
 0x1d7   :  { %3194 = vrcp.f32 %v428_v25  ;;  %v2601_v25 = vld [vmem:[%s3923_s0 + $0x18] sm:$0x3] }
 0x1d8   :  { %3196 = vrcp.f32 %v505_v26  ;;  %v2602_v26 = vld [vmem:[%s3923_s0 + $0x1a] sm:$0x3] }
 0x1dd   :  { %v3191_v27 = vpop.eup %3190 }
 0x1de   :  { %v3193_v28 = vpop.eup %3192  ;;  %v654_v32 = vadd.f32 1.0, %v3191_v27 }
 0x1e0   :  { %3198 = vrcp.f32 %v654_v32 }
 0x1e4   :  { %v3195_v29 = vpop.eup %3194 }
 0x1e5   :  { %v3197_v30 = vpop.eup %3196  ;;  %v658_v31 = vmul.f32 %v3195_v29, %v3193_v28 }
 0x1e6   :  { %v657_v33 = vmul.f32 %v3197_v30, %v3489_v47 }
 0x1e8   :  { %v3549_v34 = vadd.f32 %v658_v31, %v657_v33 }
 0x1ea   :  { %3200 = vtanh.f32 %v3549_v34 }
 0x1ed   :  { %v3199_v35 = vpop.eup %3198 }
 0x1f7   :  { %v3201_v36 = vpop.eup %3200 }
 0x1f8   :  { %v661_v37 = vmul.f32 %v3201_v36, %v3199_v35  ;;  %v2604_v35 = vld [vmem:[%s3923_s0 + $0x1e] sm:$0x3] }
 0x1fa   :  { %2913 = vmatmul.mubr.msk.f32.vlgmr.msra.gmra.mxu0 %vm34_vm1, %v661_v37  ;;  %2924 = vmatmul.mubr.msk.f32.vlgmr.msra.gmra.mxu1 %vm34_vm1, %v661_v37 }
 0x1fb   :  { %2927 = vmatpush3.msra.mxu0 %v3394_v9  ;;  %2938 = vmatpush3.msra.mxu1 %v3399_v10 }
 0x1fc   :  { %2928 = vmatprep.subr.mxu0 %v3314_v0  ;;  %2939 = vmatprep.subr.mxu1 %v3314_v0 }
 0x1fd   :  { %2929 = vmatpush3.msra.mxu0 %v3408_v11  ;;  %2940 = vmatpush3.msra.mxu1 %v3413_v12 }
 0x1fe   :  { %2930 = vmatprep.subr.mxu0 %v3314_v0  ;;  %2941 = vmatprep.subr.mxu1 %v3314_v0 }
 0x1ff   :  { %2931 = vmatpush3.msra.mxu0 %v3422_v13  ;;  %2942 = vmatpush3.msra.mxu1 %v3427_v14 }
 0x200   :  { %2932 = vmatprep.subr.mxu0 %v3314_v0  ;;  %2943 = vmatprep.subr.mxu1 %v3314_v0 }
 0x201   :  { %2933 = vmatpush3.msra.mxu0 %v3436_v15  ;;  %2934 = vmatprep.mubr.msk.f32.mxu0 %vm3315_vm0, %v3314_v0 }
 0x202   :  { %2944 = vmatpush3.msra.mxu1 %v3443_v16  ;;  %2945 = vmatprep.mubr.msk.f32.mxu1 %vm3315_vm0, %v3314_v0 }
 0x203   :  { %2935 = vmatmul.mubr.msk.f32.vlgmr.msra.gmra.mxu0 %vm34_vm1, %v661_v37  ;;  %2946 = vmatmul.mubr.msk.f32.vlgmr.msra.gmra.mxu1 %vm34_vm1, %v661_v37 }
 0x204   :  { %2948 = vmatprep.subr.mxu0 %v3314_v0  ;;  %2959 = vmatprep.subr.mxu1 %v3314_v0 }
 0x205   :  { %2949 = vmatpush3.msra.mxu0 %v3336_v1  ;;  %2960 = vmatpush3.msra.mxu1 %v3341_v2 }
 0x206   :  { %2950 = vmatprep.subr.mxu0 %v3314_v0  ;;  %2961 = vmatprep.subr.mxu1 %v3314_v0 }
 0x207   :  { %2951 = vmatpush3.msra.mxu0 %v3346_v3  ;;  %2962 = vmatpush3.msra.mxu1 %v3353_v4 }
 0x208   :  { %2952 = vmatprep.subr.mxu0 %v3314_v0  ;;  %2963 = vmatprep.subr.mxu1 %v3314_v0 }
 0x209   :  { %2953 = vmatpush3.msra.mxu0 %v3360_v5  ;;  %2964 = vmatpush3.msra.mxu1 %v3365_v6 }
 0x20a   :  { %2954 = vmatprep.subr.mxu0 %v3314_v0  ;;  %2965 = vmatprep.subr.mxu1 %v3314_v0 }
 0x20b   :  { %2955 = vmatpush3.msra.mxu0 %v3374_v7  ;;  %2966 = vmatpush3.msra.mxu1 %v3381_v8 }
 0x20c   :  { %2956 = vmatprep.mubr.msk.f32.mxu0 %vm3315_vm0, %v3314_v0  ;;  %2967 = vmatprep.mubr.msk.f32.mxu1 %vm3315_vm0, %v3314_v0 }
 0x20d   :  { %2970 = vmatprep.subr.mxu0 %v3314_v0  ;;  %2981 = vmatprep.subr.mxu1 %v3314_v0 }
 0x2ba   :  { %v736_v40 = vpop.f32.mrf.mxu0  ;;  %v813_v41 = vpop.f32.mrf.mxu1 }
 0x2bb   :  { %v740_v42 = vadd.f32 %v2590_v38, %v736_v40  ;;  %v817_v43 = vadd.f32 %v2591_v39, %v813_v41  ;;  %v2603_v41 = vld [vmem:[%s3923_s0 + $0x1c] sm:$0x3] }
 0x2bc   :  { %v2914_v44 = vpop.f32.mrf.mxu0  ;;  %v2925_v45 = vpop.f32.mrf.mxu1 }
 0x2bd   :  { %v2595_v46 = vmul.f32 -1.442695, %v740_v42  ;;  %v2597_v47 = vmul.f32 -1.442695, %v817_v43 }
 0x2bf   :  { %3202 = vpow2.f32 %v2595_v46 }
 0x2c0   :  { %3204 = vpow2.f32 %v2597_v47 }
 0x2c3   :  { %v890_v49 = vpop.f32.mrf.mxu0  ;;  %v962_v50 = vpop.f32.mrf.mxu1 }
 0x2c4   :  { %v966_v51 = vadd.f32 %v2593_v48, %v962_v50  ;;  %v894_v56 = vadd.f32 %v2592_v54, %v890_v49 }
 0x2c5   :  { %v2936_v52 = vpop.f32.mrf.mxu0  ;;  %v2947_v53 = vpop.f32.mrf.mxu1 }
 0x2c6   :  { %v2600_v55 = vmul.f32 -1.442695, %v966_v51 }
 0x2c8   :  { %3206 = vpow2.f32 %v2600_v55 }
 0x2c9   :  { %3208 = vtanh.f32 %v894_v56 }
 0x2cc   :  { %v3203_v57 = vpop.eup %3202 }
 0x2cd   :  { %v3205_v58 = vpop.eup %3204  ;;  %v744_v59 = vadd.f32 1.0, %v3203_v57 }
 0x2ce   :  { %v821_v60 = vadd.f32 1.0, %v3205_v58 }
 0x2cf   :  { %3210 = vrcp.f32 %v744_v59  ;;  %v2612_v59 = vld [vmem:[%s3923_s0 + $0x20] sm:$0x3] }
 0x2d0   :  { %3212 = vrcp.f32 %v821_v60  ;;  %v2613_v60 = vld [vmem:[%s3923_s0 + $0x22] sm:$0x3] }
 0x2d5   :  { %v3207_v61 = vpop.eup %3206 }
 0x2d6   :  { %v3209_v62 = vpop.eup %3208  ;;  %v970_v19 = vadd.f32 1.0, %v3207_v61 }
 0x2d8   :  { %3214 = vrcp.f32 %v970_v19 }
 0x2dc   :  { %v3211_v63 = vpop.eup %3210 }
 0x2dd   :  { %v3213_v17 = vpop.eup %3212  ;;  %v974_v18 = vmul.f32 %v3211_v63, %v3209_v62 }
 0x2de   :  { %v973_v20 = vmul.f32 %v3213_v17, %v3549_v34 }
 0x2e0   :  { %v3609_v21 = vadd.f32 %v974_v18, %v973_v20 }
 0x2e2   :  { %3216 = vtanh.f32 %v3609_v21 }
 0x2e5   :  { %v3215_v22 = vpop.eup %3214 }
 0x2ef   :  { %v3217_v23 = vpop.eup %3216 }
 0x2f0   :  { %v977_v24 = vmul.f32 %v3217_v23, %v3215_v22  ;;  %v2615_v22 = vld [vmem:[%s3923_s0 + $0x26] sm:$0x3] }
 0x2f2   :  { %2957 = vmatmul.mubr.msk.f32.vlgmr.msra.gmra.mxu0 %vm34_vm1, %v977_v24  ;;  %2968 = vmatmul.mubr.msk.f32.vlgmr.msra.gmra.mxu1 %vm34_vm1, %v977_v24 }
 0x2f3   :  { %2971 = vmatpush3.msra.mxu0 %v3394_v9  ;;  %2982 = vmatpush3.msra.mxu1 %v3399_v10 }
 0x2f4   :  { %2972 = vmatprep.subr.mxu0 %v3314_v0  ;;  %2983 = vmatprep.subr.mxu1 %v3314_v0 }
 0x2f5   :  { %2973 = vmatpush3.msra.mxu0 %v3408_v11  ;;  %2984 = vmatpush3.msra.mxu1 %v3413_v12 }
 0x2f6   :  { %2974 = vmatprep.subr.mxu0 %v3314_v0  ;;  %2985 = vmatprep.subr.mxu1 %v3314_v0 }
 0x2f7   :  { %2975 = vmatpush3.msra.mxu0 %v3422_v13  ;;  %2986 = vmatpush3.msra.mxu1 %v3427_v14 }
 0x2f8   :  { %2976 = vmatprep.subr.mxu0 %v3314_v0  ;;  %2987 = vmatprep.subr.mxu1 %v3314_v0 }
 0x2f9   :  { %2977 = vmatpush3.msra.mxu0 %v3436_v15  ;;  %2978 = vmatprep.mubr.msk.f32.mxu0 %vm3315_vm0, %v3314_v0 }
 0x2fa   :  { %2988 = vmatpush3.msra.mxu1 %v3443_v16  ;;  %2989 = vmatprep.mubr.msk.f32.mxu1 %vm3315_vm0, %v3314_v0 }
 0x2fb   :  { %2979 = vmatmul.mubr.msk.f32.vlgmr.msra.gmra.mxu0 %vm34_vm1, %v977_v24  ;;  %2990 = vmatmul.mubr.msk.f32.vlgmr.msra.gmra.mxu1 %vm34_vm1, %v977_v24 }
 0x2fc   :  { %2992 = vmatprep.subr.mxu0 %v3314_v0  ;;  %3003 = vmatprep.subr.mxu1 %v3314_v0 }
 0x2fd   :  { %2993 = vmatpush3.msra.mxu0 %v3336_v1  ;;  %3004 = vmatpush3.msra.mxu1 %v3341_v2 }
 0x2fe   :  { %2994 = vmatprep.subr.mxu0 %v3314_v0  ;;  %3005 = vmatprep.subr.mxu1 %v3314_v0 }
 0x2ff   :  { %2995 = vmatpush3.msra.mxu0 %v3346_v3  ;;  %3006 = vmatpush3.msra.mxu1 %v3353_v4 }
 0x300   :  { %2996 = vmatprep.subr.mxu0 %v3314_v0  ;;  %3007 = vmatprep.subr.mxu1 %v3314_v0 }
 0x301   :  { %2997 = vmatpush3.msra.mxu0 %v3360_v5  ;;  %3008 = vmatpush3.msra.mxu1 %v3365_v6 }
 0x302   :  { %2998 = vmatprep.subr.mxu0 %v3314_v0  ;;  %3009 = vmatprep.subr.mxu1 %v3314_v0 }
 0x303   :  { %2999 = vmatpush3.msra.mxu0 %v3374_v7  ;;  %3010 = vmatpush3.msra.mxu1 %v3381_v8 }
 0x304   :  { %3000 = vmatprep.mubr.msk.f32.mxu0 %vm3315_vm0, %v3314_v0  ;;  %3011 = vmatprep.mubr.msk.f32.mxu1 %vm3315_vm0, %v3314_v0 }
 0x305   :  { %3014 = vmatprep.subr.mxu0 %v3314_v0  ;;  %3025 = vmatprep.subr.mxu1 %v3314_v0 }
 0x3b2   :  { %v1052_v27 = vpop.f32.mrf.mxu0  ;;  %v1129_v28 = vpop.f32.mrf.mxu1 }
 0x3b3   :  { %v1056_v29 = vadd.f32 %v2601_v25, %v1052_v27  ;;  %v1133_v30 = vadd.f32 %v2602_v26, %v1129_v28  ;;  %v2614_v28 = vld [vmem:[%s3923_s0 + $0x24] sm:$0x3] }
 0x3b4   :  { %v2958_v31 = vpop.f32.mrf.mxu0  ;;  %v2969_v32 = vpop.f32.mrf.mxu1 }
 0x3b5   :  { %v2606_v33 = vmul.f32 -1.442695, %v1056_v29  ;;  %v2608_v34 = vmul.f32 -1.442695, %v1133_v30 }
 0x3b7   :  { %3218 = vpow2.f32 %v2606_v33 }
 0x3b8   :  { %3220 = vpow2.f32 %v2608_v34 }
 0x3bb   :  { %v1206_v36 = vpop.f32.mrf.mxu0  ;;  %v1278_v37 = vpop.f32.mrf.mxu1 }
 0x3bc   :  { %v1282_v38 = vadd.f32 %v2604_v35, %v1278_v37  ;;  %v1210_v43 = vadd.f32 %v2603_v41, %v1206_v36 }
 0x3bd   :  { %v2980_v39 = vpop.f32.mrf.mxu0  ;;  %v2991_v40 = vpop.f32.mrf.mxu1 }
 0x3be   :  { %v2611_v42 = vmul.f32 -1.442695, %v1282_v38 }
 0x3c0   :  { %3222 = vpow2.f32 %v2611_v42 }
 0x3c1   :  { %3224 = vtanh.f32 %v1210_v43 }
 0x3c4   :  { %v3219_v44 = vpop.eup %3218 }
 0x3c5   :  { %v3221_v45 = vpop.eup %3220  ;;  %v1060_v46 = vadd.f32 1.0, %v3219_v44 }
 0x3c6   :  { %v1137_v47 = vadd.f32 1.0, %v3221_v45 }
 0x3c7   :  { %3226 = vrcp.f32 %v1060_v46 }
 0x3c8   :  { %3228 = vrcp.f32 %v1137_v47 }
 0x3cd   :  { %v3223_v48 = vpop.eup %3222 }
 0x3ce   :  { %v3225_v49 = vpop.eup %3224  ;;  %v1286_v53 = vadd.f32 1.0, %v3223_v48  ;;  %v2626_v48 = vld [vmem:[%s3923_s0 + $0x2e] sm:$0x3] }
 0x3d0   :  { %3230 = vrcp.f32 %v1286_v53 }
 0x3d4   :  { %v3227_v50 = vpop.eup %3226 }
 0x3d5   :  { %v3229_v51 = vpop.eup %3228  ;;  %v1290_v52 = vmul.f32 %v3227_v50, %v3225_v49 }
 0x3d6   :  { %v1289_v54 = vmul.f32 %v3229_v51, %v3609_v21 }
 0x3d8   :  { %v3669_v55 = vadd.f32 %v1290_v52, %v1289_v54  ;;  %v2625_v54 = vld [vmem:[%s3923_s0 + $0x2c] sm:$0x3] }
 0x3da   :  { %3232 = vtanh.f32 %v3669_v55 }
 0x3dd   :  { %v3231_v56 = vpop.eup %3230 }
 0x3e7   :  { %v3233_v57 = vpop.eup %3232 }
 0x3e8   :  { %v1293_v58 = vmul.f32 %v3233_v57, %v3231_v56 }
 0x3ea   :  { %3001 = vmatmul.mubr.msk.f32.vlgmr.msra.gmra.mxu0 %vm34_vm1, %v1293_v58  ;;  %3012 = vmatmul.mubr.msk.f32.vlgmr.msra.gmra.mxu1 %vm34_vm1, %v1293_v58 }
 0x3eb   :  { %3015 = vmatpush3.msra.mxu0 %v3394_v9  ;;  %3026 = vmatpush3.msra.mxu1 %v3399_v10 }
 0x3ec   :  { %3016 = vmatprep.subr.mxu0 %v3314_v0  ;;  %3027 = vmatprep.subr.mxu1 %v3314_v0 }
 0x3ed   :  { %3017 = vmatpush3.msra.mxu0 %v3408_v11  ;;  %3028 = vmatpush3.msra.mxu1 %v3413_v12 }
 0x3ee   :  { %3018 = vmatprep.subr.mxu0 %v3314_v0  ;;  %3029 = vmatprep.subr.mxu1 %v3314_v0 }
 0x3ef   :  { %3019 = vmatpush3.msra.mxu0 %v3422_v13  ;;  %3030 = vmatpush3.msra.mxu1 %v3427_v14 }
 0x3f0   :  { %3020 = vmatprep.subr.mxu0 %v3314_v0  ;;  %3031 = vmatprep.subr.mxu1 %v3314_v0 }
 0x3f1   :  { %3021 = vmatpush3.msra.mxu0 %v3436_v15  ;;  %3022 = vmatprep.mubr.msk.f32.mxu0 %vm3315_vm0, %v3314_v0 }
 0x3f2   :  { %3032 = vmatpush3.msra.mxu1 %v3443_v16  ;;  %3033 = vmatprep.mubr.msk.f32.mxu1 %vm3315_vm0, %v3314_v0 }
 0x3f3   :  { %3023 = vmatmul.mubr.msk.f32.vlgmr.msra.gmra.mxu0 %vm34_vm1, %v1293_v58  ;;  %3034 = vmatmul.mubr.msk.f32.vlgmr.msra.gmra.mxu1 %vm34_vm1, %v1293_v58 }
 0x3f4   :  { %3036 = vmatprep.subr.mxu0 %v3314_v0  ;;  %3047 = vmatprep.subr.mxu1 %v3314_v0 }
 0x3f5   :  { %3037 = vmatpush3.msra.mxu0 %v3336_v1  ;;  %3048 = vmatpush3.msra.mxu1 %v3341_v2 }
 0x3f6   :  { %3038 = vmatprep.subr.mxu0 %v3314_v0  ;;  %3049 = vmatprep.subr.mxu1 %v3314_v0 }
 0x3f7   :  { %3039 = vmatpush3.msra.mxu0 %v3346_v3  ;;  %3050 = vmatpush3.msra.mxu1 %v3353_v4 }
 0x3f8   :  { %3040 = vmatprep.subr.mxu0 %v3314_v0  ;;  %3051 = vmatprep.subr.mxu1 %v3314_v0 }
 0x3f9   :  { %3041 = vmatpush3.msra.mxu0 %v3360_v5  ;;  %3052 = vmatpush3.msra.mxu1 %v3365_v6 }
 0x3fa   :  { %3042 = vmatprep.subr.mxu0 %v3314_v0  ;;  %3053 = vmatprep.subr.mxu1 %v3314_v0 }
 0x3fb   :  { %3043 = vmatpush3.msra.mxu0 %v3374_v7  ;;  %3054 = vmatpush3.msra.mxu1 %v3381_v8 }
 0x3fc   :  { %3044 = vmatprep.mubr.msk.f32.mxu0 %vm3315_vm0, %v3314_v0  ;;  %3055 = vmatprep.mubr.msk.f32.mxu1 %vm3315_vm0, %v3314_v0 }
 0x3fd   :  { %3058 = vmatprep.subr.mxu0 %v3314_v0  ;;  %3069 = vmatprep.subr.mxu1 %v3314_v0 }
 0x4aa   :  { %v1368_v61 = vpop.f32.mrf.mxu0  ;;  %v1445_v62 = vpop.f32.mrf.mxu1 }
 0x4ab   :  { %v1372_v63 = vadd.f32 %v2612_v59, %v1368_v61  ;;  %v1449_v17 = vadd.f32 %v2613_v60, %v1445_v62 }
 0x4ac   :  { %v3002_v18 = vpop.f32.mrf.mxu0  ;;  %v3013_v19 = vpop.f32.mrf.mxu1 }
 0x4ad   :  { %v2617_v20 = vmul.f32 -1.442695, %v1372_v63  ;;  %v2619_v21 = vmul.f32 -1.442695, %v1449_v17 }
 0x4af   :  { %3234 = vpow2.f32 %v2617_v20 }
 0x4b0   :  { %3236 = vpow2.f32 %v2619_v21 }
 0x4b3   :  { %v1522_v23 = vpop.f32.mrf.mxu0  ;;  %v1594_v24 = vpop.f32.mrf.mxu1 }
 0x4b4   :  { %v1598_v25 = vadd.f32 %v2615_v22, %v1594_v24  ;;  %v1526_v30 = vadd.f32 %v2614_v28, %v1522_v23 }
 0x4b5   :  { %v3024_v26 = vpop.f32.mrf.mxu0  ;;  %v3035_v27 = vpop.f32.mrf.mxu1 }
 0x4b6   :  { %v2622_v29 = vmul.f32 -1.442695, %v1598_v25  ;;  %v2634_v25 = vld [vmem:[%s3923_s0 + $0x30] sm:$0x3]  ;;  %v2635_v26 = vld [vmem:[%s3923_s0 + $0x32] sm:$0x3] }
 0x4b8   :  { %3238 = vpow2.f32 %v2622_v29 }
 0x4b9   :  { %3240 = vtanh.f32 %v1526_v30 }
 0x4bc   :  { %v3235_v31 = vpop.eup %3234 }
 0x4bd   :  { %v3237_v32 = vpop.eup %3236  ;;  %v1376_v33 = vadd.f32 1.0, %v3235_v31 }
 0x4be   :  { %v1453_v34 = vadd.f32 1.0, %v3237_v32 }
 0x4bf   :  { %3242 = vrcp.f32 %v1376_v33 }
 0x4c0   :  { %3244 = vrcp.f32 %v1453_v34 }
 0x4c5   :  { %v3239_v35 = vpop.eup %3238 }
 0x4c6   :  { %v3241_v36 = vpop.eup %3240  ;;  %v1602_v40 = vadd.f32 1.0, %v3239_v35  ;;  %v2637_v35 = vld [vmem:[%s3923_s0 + $0x36] sm:$0x3] }
 0x4c8   :  { %3246 = vrcp.f32 %v1602_v40 }
 0x4cc   :  { %v3243_v37 = vpop.eup %3242 }
 0x4cd   :  { %v3245_v38 = vpop.eup %3244  ;;  %v1606_v39 = vmul.f32 %v3243_v37, %v3241_v36 }
 0x4ce   :  { %v1605_v41 = vmul.f32 %v3245_v38, %v3669_v55 }
 0x4d0   :  { %v3729_v42 = vadd.f32 %v1606_v39, %v1605_v41  ;;  %v2636_v41 = vld [vmem:[%s3923_s0 + $0x34] sm:$0x3] }
 0x4d2   :  { %3248 = vtanh.f32 %v3729_v42 }
 0x4d5   :  { %v3247_v43 = vpop.eup %3246 }
 0x4df   :  { %v3249_v44 = vpop.eup %3248 }
 0x4e0   :  { %v1609_v45 = vmul.f32 %v3249_v44, %v3247_v43 }
 0x4e2   :  { %3045 = vmatmul.mubr.msk.f32.vlgmr.msra.gmra.mxu0 %vm34_vm1, %v1609_v45  ;;  %3056 = vmatmul.mubr.msk.f32.vlgmr.msra.gmra.mxu1 %vm34_vm1, %v1609_v45 }
 0x4e3   :  { %3059 = vmatpush3.msra.mxu0 %v3394_v9  ;;  %3070 = vmatpush3.msra.mxu1 %v3399_v10 }
 0x4e4   :  { %3060 = vmatprep.subr.mxu0 %v3314_v0  ;;  %3071 = vmatprep.subr.mxu1 %v3314_v0 }
 0x4e5   :  { %3061 = vmatpush3.msra.mxu0 %v3408_v11  ;;  %3072 = vmatpush3.msra.mxu1 %v3413_v12 }
 0x4e6   :  { %3062 = vmatprep.subr.mxu0 %v3314_v0  ;;  %3073 = vmatprep.subr.mxu1 %v3314_v0 }
 0x4e7   :  { %3063 = vmatpush3.msra.mxu0 %v3422_v13  ;;  %3074 = vmatpush3.msra.mxu1 %v3427_v14 }
 0x4e8   :  { %3064 = vmatprep.subr.mxu0 %v3314_v0  ;;  %3075 = vmatprep.subr.mxu1 %v3314_v0 }
 0x4e9   :  { %3065 = vmatpush3.msra.mxu0 %v3436_v15  ;;  %3066 = vmatprep.mubr.msk.f32.mxu0 %vm3315_vm0, %v3314_v0 }
 0x4ea   :  { %3076 = vmatpush3.msra.mxu1 %v3443_v16  ;;  %3077 = vmatprep.mubr.msk.f32.mxu1 %vm3315_vm0, %v3314_v0 }
 0x4eb   :  { %3067 = vmatmul.mubr.msk.f32.vlgmr.msra.gmra.mxu0 %vm34_vm1, %v1609_v45  ;;  %3078 = vmatmul.mubr.msk.f32.vlgmr.msra.gmra.mxu1 %vm34_vm1, %v1609_v45 }
 0x4ec   :  { %3080 = vmatprep.subr.mxu0 %v3314_v0  ;;  %3091 = vmatprep.subr.mxu1 %v3314_v0 }
 0x4ed   :  { %3081 = vmatpush3.msra.mxu0 %v3336_v1  ;;  %3092 = vmatpush3.msra.mxu1 %v3341_v2  ;;  %v2623_v1 = vld [vmem:[%s3923_s0 + $0x28] sm:$0x3]  ;;  %v2624_v2 = vld [vmem:[%s3923_s0 + $0x2a] sm:$0x3] }
 0x4ee   :  { %3082 = vmatprep.subr.mxu0 %v3314_v0  ;;  %3093 = vmatprep.subr.mxu1 %v3314_v0 }
 0x4ef   :  { %3083 = vmatpush3.msra.mxu0 %v3346_v3  ;;  %3094 = vmatpush3.msra.mxu1 %v3353_v4 }
 0x4f0   :  { %3084 = vmatprep.subr.mxu0 %v3314_v0  ;;  %3095 = vmatprep.subr.mxu1 %v3314_v0 }
 0x4f1   :  { %3085 = vmatpush3.msra.mxu0 %v3360_v5  ;;  %3096 = vmatpush3.msra.mxu1 %v3365_v6 }
 0x4f2   :  { %3086 = vmatprep.subr.mxu0 %v3314_v0  ;;  %3097 = vmatprep.subr.mxu1 %v3314_v0 }
 0x4f3   :  { %3087 = vmatpush3.msra.mxu0 %v3374_v7  ;;  %3098 = vmatpush3.msra.mxu1 %v3381_v8 }
 0x4f4   :  { %3088 = vmatprep.mubr.msk.f32.mxu0 %vm3315_vm0, %v3314_v0  ;;  %3099 = vmatprep.mubr.msk.f32.mxu1 %vm3315_vm0, %v3314_v0 }
 0x4f5   :  { %3102 = vmatprep.subr.mxu0 %v3314_v0  ;;  %3113 = vmatprep.subr.mxu1 %v3314_v0 }
 0x5a2   :  { %v1684_v3 = vpop.f32.mrf.mxu0  ;;  %v1761_v4 = vpop.f32.mrf.mxu1 }
 0x5a3   :  { %v1688_v5 = vadd.f32 %v2623_v1, %v1684_v3  ;;  %v1765_v6 = vadd.f32 %v2624_v2, %v1761_v4 }
 0x5a4   :  { %v3046_v7 = vpop.f32.mrf.mxu0  ;;  %v3057_v8 = vpop.f32.mrf.mxu1 }
 0x5a5   :  { %v2628_v46 = vmul.f32 -1.442695, %v1688_v5  ;;  %v2630_v47 = vmul.f32 -1.442695, %v1765_v6 }
 0x5a7   :  { %3250 = vpow2.f32 %v2628_v46 }
 0x5a8   :  { %3252 = vpow2.f32 %v2630_v47 }
 0x5ab   :  { %v1838_v49 = vpop.f32.mrf.mxu0  ;;  %v1910_v50 = vpop.f32.mrf.mxu1 }
 0x5ac   :  { %v1914_v51 = vadd.f32 %v2626_v48, %v1910_v50  ;;  %v1842_v56 = vadd.f32 %v2625_v54, %v1838_v49  ;;  %v3309_v54 = vld [vmem:[%s3922_s1 + $0x70] sm:$0xff] }
 0x5ad   :  { %v3068_v52 = vpop.f32.mrf.mxu0  ;;  %v3079_v53 = vpop.f32.mrf.mxu1 }
 0x5ae   :  { %v2633_v55 = vmul.f32 -1.442695, %v1914_v51  ;;  %v3306_v51 = vld [vmem:[%s3922_s1 + $0x58] sm:$0xff]  ;;  %v3308_v53 = vld [vmem:[%s3922_s1 + $0x50] sm:$0xff] }
 0x5af   :  { %v3307_v52 = vld [vmem:[%s3922_s1 + $0x78] sm:$0xff] }
 0x5b0   :  { %3254 = vpow2.f32 %v2633_v55  ;;  %v3310_v55 = vld [vmem:[%s3922_s1 + $0x48] sm:$0xff] }
 0x5b1   :  { %3256 = vtanh.f32 %v1842_v56  ;;  %v3311_v56 = vld [vmem:[%s3922_s1 + $0x68] sm:$0xff] }
 0x5b4   :  { %v3251_v57 = vpop.eup %3250 }
 0x5b5   :  { %v3253_v58 = vpop.eup %3252  ;;  %v1692_v59 = vadd.f32 1.0, %v3251_v57  ;;  %v3312_v57 = vld [vmem:[%s3922_s1 + $0x40] sm:$0xff] }
 0x5b6   :  { %v1769_v60 = vadd.f32 1.0, %v3253_v58  ;;  %v3313_v58 = vld [vmem:[%s3922_s1 + $0x60] sm:$0xff] }
 0x5b7   :  { %3258 = vrcp.f32 %v1692_v59  ;;  %v2645_v59 = vld [vmem:[%s3923_s0 + $0x38] sm:$0x3] }
 0x5b8   :  { %3260 = vrcp.f32 %v1769_v60  ;;  %v2646_v60 = vld [vmem:[%s3923_s0 + $0x3a] sm:$0x3] }
 0x5bd   :  { %v3255_v61 = vpop.eup %3254 }
 0x5be   :  { %v3257_v62 = vpop.eup %3256  ;;  %v1918_v19 = vadd.f32 1.0, %v3255_v61 }
 0x5c0   :  { %3262 = vrcp.f32 %v1918_v19 }
 0x5c4   :  { %v3259_v63 = vpop.eup %3258 }
 0x5c5   :  { %v3261_v17 = vpop.eup %3260  ;;  %v1922_v18 = vmul.f32 %v3259_v63, %v3257_v62 }
 0x5c6   :  { %v1921_v20 = vmul.f32 %v3261_v17, %v3729_v42 }
 0x5c8   :  { %v3789_v21 = vadd.f32 %v1922_v18, %v1921_v20 }
 0x5ca   :  { %3264 = vtanh.f32 %v3789_v21 }
 0x5cd   :  { %v3263_v22 = vpop.eup %3262 }
 0x5d7   :  { %v3265_v23 = vpop.eup %3264 }
 0x5d8   :  { %v1925_v24 = vmul.f32 %v3265_v23, %v3263_v22 }
 0x5da   :  { %3089 = vmatmul.mubr.msk.f32.vlgmr.msra.gmra.mxu0 %vm34_vm1, %v1925_v24  ;;  %3100 = vmatmul.mubr.msk.f32.vlgmr.msra.gmra.mxu1 %vm34_vm1, %v1925_v24 }
 0x5db   :  { %3103 = vmatpush3.msra.mxu0 %v3394_v9  ;;  %3114 = vmatpush3.msra.mxu1 %v3399_v10  ;;  %v3298_v9 = vld [vmem:[%s3922_s1 + $0x18] sm:$0xff] }
 0x5dc   :  { %3104 = vmatprep.subr.mxu0 %v3314_v0  ;;  %3115 = vmatprep.subr.mxu1 %v3314_v0  ;;  %v3299_v10 = vld [vmem:[%s3922_s1 + $0x38] sm:$0xff] }
 0x5dd   :  { %3105 = vmatpush3.msra.mxu0 %v3408_v11  ;;  %3116 = vmatpush3.msra.mxu1 %v3413_v12  ;;  %v3300_v11 = vld [vmem:[%s3922_s1 + $0x10] sm:$0xff] }
 0x5de   :  { %3106 = vmatprep.subr.mxu0 %v3314_v0  ;;  %3117 = vmatprep.subr.mxu1 %v3314_v0  ;;  %v3301_v12 = vld [vmem:[%s3922_s1 + $0x30] sm:$0xff] }
 0x5df   :  { %3107 = vmatpush3.msra.mxu0 %v3422_v13  ;;  %3118 = vmatpush3.msra.mxu1 %v3427_v14  ;;  %v3302_v13 = vld [vmem:[%s3922_s1 + $0x8] sm:$0xff] }
 0x5e0   :  { %3108 = vmatprep.subr.mxu0 %v3314_v0  ;;  %3119 = vmatprep.subr.mxu1 %v3314_v0  ;;  %v3303_v14 = vld [vmem:[%s3922_s1 + $0x28] sm:$0xff] }
 0x5e1   :  { %3109 = vmatpush3.msra.mxu0 %v3436_v15  ;;  %3110 = vmatprep.mubr.msk.f32.mxu0 %vm3315_vm0, %v3314_v0  ;;  %v3304_v15 = vld [vmem:[%s3922_s1] sm:$0xff] }
 0x5e2   :  { %3120 = vmatpush3.msra.mxu1 %v3443_v16  ;;  %3121 = vmatprep.mubr.msk.f32.mxu1 %vm3315_vm0, %v3314_v0  ;;  %v3305_v16 = vld [vmem:[%s3922_s1 + $0x20] sm:$0xff] }
 0x5e3   :  { %3111 = vmatmul.mubr.msk.f32.vlgmr.msra.gmra.mxu0 %vm34_vm1, %v1925_v24  ;;  %3122 = vmatmul.mubr.msk.f32.vlgmr.msra.gmra.mxu1 %vm34_vm1, %v1925_v24 }
 0x5e4   :  { %3124 = vmatprep.subr.mxu0 %v3314_v0  ;;  %3135 = vmatprep.subr.mxu1 %v3314_v0 }
 0x5e5   :  { %3125 = vmatpush3.msra.mxu0 %v3298_v9  ;;  %3136 = vmatpush3.msra.mxu1 %v3299_v10 }
 0x5e6   :  { %3126 = vmatprep.subr.mxu0 %v3314_v0  ;;  %3137 = vmatprep.subr.mxu1 %v3314_v0 }
 0x5e7   :  { %3127 = vmatpush3.msra.mxu0 %v3300_v11  ;;  %3138 = vmatpush3.msra.mxu1 %v3301_v12  ;;  %v2647_v11 = vld [vmem:[%s3923_s0 + $0x3c] sm:$0x3] }
 0x5e8   :  { %3128 = vmatprep.subr.mxu0 %v3314_v0  ;;  %3139 = vmatprep.subr.mxu1 %v3314_v0 }
 0x5e9   :  { %3129 = vmatpush3.msra.mxu0 %v3302_v13  ;;  %3140 = vmatpush3.msra.mxu1 %v3303_v14 }
 0x5ea   :  { %3130 = vmatprep.subr.mxu0 %v3314_v0  ;;  %3141 = vmatprep.subr.mxu1 %v3314_v0 }
 0x5eb   :  { %3131 = vmatpush3.msra.mxu0 %v3304_v15  ;;  %3142 = vmatpush3.msra.mxu1 %v3305_v16 }
 0x5ec   :  { %3132 = vmatprep.mubr.msk.f32.mxu0 %vm3315_vm0, %v3314_v0  ;;  %3143 = vmatprep.mubr.msk.f32.mxu1 %vm3315_vm0, %v3314_v0 }
 0x5ed   :  { %3146 = vmatprep.subr.mxu0 %v3314_v0  ;;  %3157 = vmatprep.subr.mxu1 %v3314_v0 }
 0x69a   :  { %v2000_v27 = vpop.f32.mrf.mxu0  ;;  %v2077_v28 = vpop.f32.mrf.mxu1 }
 0x69b   :  { %v2004_v29 = vadd.f32 %v2634_v25, %v2000_v27  ;;  %v2081_v30 = vadd.f32 %v2635_v26, %v2077_v28 }
 0x69c   :  { %v3090_v31 = vpop.f32.mrf.mxu0  ;;  %v3101_v32 = vpop.f32.mrf.mxu1 }
 0x69d   :  { %v2639_v33 = vmul.f32 -1.442695, %v2004_v29  ;;  %v2641_v34 = vmul.f32 -1.442695, %v2081_v30 }
 0x69f   :  { %3266 = vpow2.f32 %v2639_v33 }
 0x6a0   :  { %3268 = vpow2.f32 %v2641_v34 }
 0x6a3   :  { %v2154_v36 = vpop.f32.mrf.mxu0  ;;  %v2226_v37 = vpop.f32.mrf.mxu1 }
 0x6a4   :  { %v2230_v38 = vadd.f32 %v2637_v35, %v2226_v37  ;;  %v2158_v43 = vadd.f32 %v2636_v41, %v2154_v36 }
 0x6a5   :  { %v3112_v39 = vpop.f32.mrf.mxu0  ;;  %v3123_v40 = vpop.f32.mrf.mxu1 }
 0x6a6   :  { %v2644_v42 = vmul.f32 -1.442695, %v2230_v38 }
 0x6a8   :  { %3270 = vpow2.f32 %v2644_v42 }
 0x6a9   :  { %3272 = vtanh.f32 %v2158_v43 }
 0x6ac   :  { %v3267_v44 = vpop.eup %3266 }
 0x6ad   :  { %v3269_v45 = vpop.eup %3268  ;;  %v2008_v1 = vadd.f32 1.0, %v3267_v44 }
 0x6ae   :  { %v2085_v2 = vadd.f32 1.0, %v3269_v45 }
 0x6af   :  { %3274 = vrcp.f32 %v2008_v1 }
 0x6b0   :  { %3276 = vrcp.f32 %v2085_v2 }
 0x6b5   :  { %v3271_v3 = vpop.eup %3270 }
 0x6b6   :  { %v3273_v4 = vpop.eup %3272  ;;  %v2234_v8 = vadd.f32 1.0, %v3271_v3 }
 0x6b8   :  { %3278 = vrcp.f32 %v2234_v8 }
 0x6bc   :  { %v3275_v5 = vpop.eup %3274 }
 0x6bd   :  { %v3277_v6 = vpop.eup %3276  ;;  %v2238_v7 = vmul.f32 %v3275_v5, %v3273_v4 }
 0x6be   :  { %v2237_v46 = vmul.f32 %v3277_v6, %v3789_v21  ;;  %v2648_v21 = vld [vmem:[%s3923_s0 + $0x3e] sm:$0x3] }
 0x6c0   :  { %v3865_v47 = vadd.f32 %v2238_v7, %v2237_v46 }
 0x6c2   :  { %3280 = vtanh.f32 %v3865_v47 }
 0x6c5   :  { %v3279_v48 = vpop.eup %3278 }
 0x6cf   :  { %v3281_v49 = vpop.eup %3280 }
 0x6d0   :  { %v2241_v50 = vmul.f32 %v3281_v49, %v3279_v48 }
 0x6d2   :  { %3133 = vmatmul.mubr.msk.f32.vlgmr.msra.gmra.mxu0 %vm34_vm1, %v2241_v50  ;;  %3144 = vmatmul.mubr.msk.f32.vlgmr.msra.gmra.mxu1 %vm34_vm1, %v2241_v50 }
 0x6d3   :  { %3147 = vmatpush3.msra.mxu0 %v3306_v51  ;;  %3158 = vmatpush3.msra.mxu1 %v3307_v52 }
 0x6d4   :  { %3148 = vmatprep.subr.mxu0 %v3314_v0  ;;  %3159 = vmatprep.subr.mxu1 %v3314_v0 }
 0x6d5   :  { %3149 = vmatpush3.msra.mxu0 %v3308_v53  ;;  %3160 = vmatpush3.msra.mxu1 %v3309_v54 }
 0x6d6   :  { %3150 = vmatprep.subr.mxu0 %v3314_v0  ;;  %3161 = vmatprep.subr.mxu1 %v3314_v0 }
 0x6d7   :  { %3151 = vmatpush3.msra.mxu0 %v3310_v55  ;;  %3162 = vmatpush3.msra.mxu1 %v3311_v56 }
 0x6d8   :  { %3152 = vmatprep.subr.mxu0 %v3314_v0  ;;  %3163 = vmatprep.subr.mxu1 %v3314_v0 }
 0x6d9   :  { %3153 = vmatpush3.msra.mxu0 %v3312_v57  ;;  %3154 = vmatprep.mubr.msk.f32.mxu0 %vm3315_vm0, %v3314_v0 }
 0x6da   :  { %3164 = vmatpush3.msra.mxu1 %v3313_v58  ;;  %3165 = vmatprep.mubr.msk.f32.mxu1 %vm3315_vm0, %v3314_v0 }
 0x6db   :  { %3155 = vmatmul.mubr.msk.f32.vlgmr.msra.gmra.mxu0 %vm34_vm1, %v2241_v50  ;;  %3166 = vmatmul.mubr.msk.f32.vlgmr.msra.gmra.mxu1 %vm34_vm1, %v2241_v50 }
 0x792   :  { %v2316_v61 = vpop.f32.mrf.mxu0  ;;  %v2393_v62 = vpop.f32.mrf.mxu1 }
 0x793   :  { %v2320_v63 = vadd.f32 %v2645_v59, %v2316_v61  ;;  %v2397_v17 = vadd.f32 %v2646_v60, %v2393_v62 }
 0x794   :  { %v3134_v18 = vpop.f32.mrf.mxu0  ;;  %v3145_v19 = vpop.f32.mrf.mxu1 }
 0x795   :  { %v2650_v20 = vmul.f32 -1.442695, %v2320_v63  ;;  %v2652_v0 = vmul.f32 -1.442695, %v2397_v17 }
 0x797   :  { %3282 = vpow2.f32 %v2650_v20 }
 0x798   :  { %3284 = vpow2.f32 %v2652_v0 }
 0x79b   :  { %v2470_v22 = vpop.f32.mrf.mxu0  ;;  %v2542_v23 = vpop.f32.mrf.mxu1 }
 0x79c   :  { %v2546_v24 = vadd.f32 %v2648_v21, %v2542_v23  ;;  %v2474_v13 = vadd.f32 %v2647_v11, %v2470_v22 }
 0x79d   :  { %v3156_v9 = vpop.f32.mrf.mxu0  ;;  %v3167_v10 = vpop.f32.mrf.mxu1 }
 0x79e   :  { %v2655_v12 = vmul.f32 -1.442695, %v2546_v24 }
 0x7a0   :  { %3286 = vpow2.f32 %v2655_v12 }
 0x7a1   :  { %3288 = vtanh.f32 %v2474_v13 }
 0x7a4   :  { %v3283_v14 = vpop.eup %3282 }
 0x7a5   :  { %v3285_v15 = vpop.eup %3284  ;;  %v2324_v16 = vadd.f32 1.0, %v3283_v14 }
 0x7a6   :  { %v2401_v25 = vadd.f32 1.0, %v3285_v15 }
 0x7a7   :  { %3290 = vrcp.f32 %v2324_v16 }
 0x7a8   :  { %3292 = vrcp.f32 %v2401_v25 }
 0x7ad   :  { %v3287_v26 = vpop.eup %3286 }
 0x7ae   :  { %v3289_v27 = vpop.eup %3288  ;;  %v2550_v31 = vadd.f32 1.0, %v3287_v26 }
 0x7b0   :  { %3294 = vrcp.f32 %v2550_v31 }
 0x7b4   :  { %v3291_v28 = vpop.eup %3290 }
 0x7b5   :  { %v3293_v29 = vpop.eup %3292  ;;  %v2554_v30 = vmul.f32 %v3291_v28, %v3289_v27 }
 0x7b6   :  { %v2553_v32 = vmul.f32 %v3293_v29, %v3865_v47 }
 0x7b8   :  { %v2555_v33 = vadd.f32 %v2554_v30, %v2553_v32 }
 0x7ba   :  { %3296 = vtanh.f32 %v2555_v33 }
 0x7bd   :  { %v3295_v34 = vpop.eup %3294 }
 0x7c7   :  { %v3297_v35 = vpop.eup %3296 }
 0x7c8   :  { %v2557_v36 = vmul.f32 %v3297_v35, %v3295_v34 }
 0x7ca   :  { %2559 = vst.msk [vmem:[%s3924_s2] sm:$0x3] %vm2558_vm2, %v2557_v36 }

</bundles_post_ra>
